<compile_context>
chip_gen: v7x
topology: tpu7x:2x2x1
jax: 0.10.0
libtpu: 0.0.40
codegen_flags: <defaults>
</compile_context>

<pallas_src>
import functools

import numpy as np
import jax
import jax.numpy as jnp
from jax.experimental import pallas as pl
from jax.experimental.pallas import tpu as pltpu


OUT_W = 128            # lane-dense final output width: 56 valid cols (2 rows x 28) + zero pad


def _round_up(x, m):
    return ((x + m - 1) // m) * m


def _dims(hd):
    """Row widths (lane dim) of the three deconv inputs, unpadded and padded to 128."""
    wc1 = 4 * (4 * hd)    # ct1 input rows:  4 cols x 4hd ch
    wc2 = 7 * (2 * hd)    # ct2 input rows:  7 cols x 2hd ch   (after the [:7,:7] crop)
    wc3 = 11 * hd         # ct3 input rows: 11 cols x  hd ch
    return wc1, wc2, wc3, _round_up(wc1, 128), _round_up(wc2, 128), _round_up(wc3, 128)


# ----------------------------------------------------------------------------- kernel
def _make_kernel(TB, wc1, wc1p, wc2p, wc3p):
    """One grid step processes TB samples. Activation scratch row index = spatial_row*TB + b."""

    def kernel(noise_ref, lw_ref, lb_ref, w1_ref, b1_ref, w2_ref, b2_ref,
               w3_ref, b3_ref, out_ref, xpad1, xpad2, xpad3):
        bf16 = jnp.bfloat16
        f32 = jnp.float32

        # ---- zero ONLY the padding border rows (interior rows are fully rewritten below) ----
        xpad1[0:4 * TB, :] = jnp.zeros((4 * TB, wc1p), bf16)
        xpad1[8 * TB:11 * TB, :] = jnp.zeros((3 * TB, wc1p), bf16)
        if wc1 < wc1p:  # interior padded lanes (only needed when wc1 is not already 128-aligned)
            xpad1[4 * TB:8 * TB, wc1:wc1p] = jnp.zeros((4 * TB, wc1p - wc1), bf16)
        xpad2[0:4 * TB, :] = jnp.zeros((4 * TB, wc2p), bf16)
        xpad2[11 * TB:15 * TB, :] = jnp.zeros((4 * TB, wc2p), bf16)
        xpad3[0:3 * TB, :] = jnp.zeros((3 * TB, wc3p), bf16)
        xpad3[14 * TB:17 * TB, :] = jnp.zeros((3 * TB, wc3p), bf16)

        # ---- preprocess: Linear + ReLU (weight columns pre-permuted to (row, col, ch)) ----
        h = jnp.dot(noise_ref[...].astype(bf16), lw_ref[...], preferred_element_type=f32)
        h = jnp.maximum(h + lb_ref[...], 0.0).astype(bf16)          # (TB, 4*wc1)
        for r in range(4):                                           # one TB-row store per row
            xpad1[(4 + r) * TB:(5 + r) * TB, 0:wc1] = h[:, r * wc1:(r + 1) * wc1]

        # ---- block1: ConvTranspose2d(4hd, 2hd, 5) + ReLU, [:7,:7] crop folded into W1 ----
        # output rows (o*TB + b), o in [0,7): accumulate K=5 per-offset batched dots
        acc = jnp.dot(xpad1[0:7 * TB, :], w1_ref[0], preferred_element_type=f32)
        for a in range(1, 5):
            acc += jnp.dot(xpad1[a * TB:(a + 7) * TB, :], w1_ref[a],
                           preferred_element_type=f32)
        xpad2[4 * TB:11 * TB, :] = jnp.maximum(acc + b1_ref[...], 0.0).astype(bf16)

        # ---- block2: ConvTranspose2d(2hd, hd, 5) + ReLU  -> 11x11 ----
        acc = jnp.dot(xpad2[0:11 * TB, :], w2_ref[0], preferred_element_type=f32)
        for a in range(1, 5):
            acc += jnp.dot(xpad2[a * TB:(a + 11) * TB, :], w2_ref[a],
                           preferred_element_type=f32)
        xpad3[3 * TB:14 * TB, :] = jnp.maximum(acc + b2_ref[...], 0.0).astype(bf16)

        # ---- block3: ConvTranspose2d(hd, 1, 8, stride=2) + Sigmoid, row-polyphase ----
        # each 4-row window -> output rows (2i, 2i+1), 28 cols each; N padded to 128 lanes
        acc = jnp.dot(xpad3[0:14 * TB, :], w3_ref[0], preferred_element_type=f32)
        for a in range(1, 4):
            acc += jnp.dot(xpad3[a * TB:(a + 14) * TB, :], w3_ref[a],
                           preferred_element_type=f32)
        out_ref[0, :, :] = jax.nn.sigmoid(acc + b3_ref[...])        # (14*TB, 128)

    return kernel


def _const_spec(shape):
    """Whole-array-resident BlockSpec (same block for every grid step)."""
    shape = tuple(int(s) for s in shape)
    return pl.BlockSpec(shape, lambda i: (0,) * len(shape))


def mnist_generator_forward(noise, kp, *, hidden_dim, batch_tile=None):
    B, in_dim = noise.shape
    TB = B if batch_tile is None else batch_tile
    assert B % TB == 0, "batch must be divisible by batch_tile"
    G = B // TB
    wc1, _, _, wc1p, wc2p, wc3p = _dims(hidden_dim)

    weight_keys = ("lin_w", "lin_b", "w1", "b1", "w2", "b2", "w3", "b3")
    weight_args = [kp[k] for k in weight_keys]

    out = pl.pallas_call(
        _make_kernel(TB, wc1, wc1p, wc2p, wc3p),
        out_shape=jax.ShapeDtypeStruct((G, 14 * TB, OUT_W), jnp.float32),
        grid=(G,),
        in_specs=[pl.BlockSpec((TB, in_dim), lambda i: (i, 0))]
                 + [_const_spec(w.shape) for w in weight_args],
        out_specs=pl.BlockSpec((1, 14 * TB, OUT_W), lambda i: (i, 0, 0)),
        scratch_shapes=[
            pltpu.VMEM((11 * TB, wc1p), jnp.bfloat16),   # padded 4x4x4hd rows (row*TB + b)
            pltpu.VMEM((15 * TB, wc2p), jnp.bfloat16),   # padded 7x7x2hd
            pltpu.VMEM((17 * TB, wc3p), jnp.bfloat16),   # padded 11x11xhd
        ],
        compiler_params=pltpu.CompilerParams(dimension_semantics=("parallel",)),
    )(noise, *weight_args)

    # out[g, o*TB + b, r2*28 + col] -> image[g*TB + b, 2*o + r2, col]
    img = out[:, :, :56].reshape(G, 14, TB, 2, 28)       # (g, row_pair, b, r2, col)
    img = jnp.transpose(img, (0, 2, 1, 3, 4))            # (g, b, row_pair, r2, col)
    return img.reshape(B, 28 * 28)


# -------------------------------------------------------------------- param packing
def init_params(key, input_dim, hidden_dim):
    """Synthetic params with PyTorch shapes: N(0, 0.02) weights, small nonzero biases."""
    hd = hidden_dim
    ks = jax.random.split(key, 8)
    std = 0.02
    return {
        "lin_w": std * jax.random.normal(ks[0], (4 * 4 * 4 * hd, input_dim), jnp.float32),
        "lin_b": 0.01 * jax.random.normal(ks[1], (4 * 4 * 4 * hd,), jnp.float32),
        "ct1_w": std * jax.random.normal(ks[2], (4 * hd, 2 * hd, 5, 5), jnp.float32),
        "ct1_b": 0.01 * jax.random.normal(ks[3], (2 * hd,), jnp.float32),
        "ct2_w": std * jax.random.normal(ks[4], (2 * hd, hd, 5, 5), jnp.float32),
        "ct2_b": 0.01 * jax.random.normal(ks[5], (hd,), jnp.float32),
        "ct3_w": std * jax.random.normal(ks[6], (hd, 1, 8, 8), jnp.float32),
        "ct3_b": 0.01 * jax.random.normal(ks[7], (1,), jnp.float32),
    }


def prepare_params(params, hidden_dim):
    """One-time packing of PyTorch-layout params into kernel-ready bf16 per-offset GEMM slabs."""
    hd = hidden_dim
    cin1 = 4 * hd
    wc1, wc2, wc3, wc1p, wc2p, wc3p = _dims(hd)
    p = {k: np.asarray(v, np.float32) for k, v in params.items()}

    # Linear: fold the NCHW(view) -> (row, col, ch) permutation into the weight/bias columns.
    n = np.arange(4 * 4 * cin1)
    ph, pw, pc = n // (4 * cin1), (n // cin1) % 4, n % cin1
    old = pc * 16 + ph * 4 + pw
    lin_w = p["lin_w"].T[:, old]                       # (in, 64*hd)
    lin_b = p["lin_b"][old][None, :]

    def stride1_slabs(w, win, wout, rin_pad, rout_pad):
        # slab a: rows (jw, ci) of a padded-row window at offset a; cols (ow, co);
        # kernel flip + column structure + crop baked in.
        cin, cout, K, _ = w.shape
        m = np.zeros((K, rin_pad, rout_pad), np.float32)
        for a in range(K):
            kh = K - 1 - a
            for jw in range(win):
                for ow in range(wout):
                    kw = ow - jw
                    if 0 <= kw < K:
                        m[a, jw * cin:(jw + 1) * cin, ow * cout:(ow + 1) * cout] = w[:, :, kh, kw]
        return m

    def stride2_row_slabs(w, win, wout, rin_pad, rout_pad):
        # row-polyphase: a 4-row input window -> output rows (2i, 2i+1), 2*wout valid columns.
        cin, _, K, _ = w.shape                         # (hd, 1, 8, 8)
        A = K // 2
        m = np.zeros((A, rin_pad, rout_pad), np.float32)
        for a in range(A):
            for r2 in range(2):
                kh = r2 + 2 * (A - 1 - a)
                for jw in range(win):
                    for ow in range(wout):
                        kw = ow - 2 * jw
                        if 0 <= kw < K:
                            m[a, jw * cin:(jw + 1) * cin, r2 * wout + ow] = w[:, 0, kh, kw]
        return m

    def bias_row(b, reps, pad):
        r = np.zeros((1, pad), np.float32)
        r[0, :reps * b.shape[0]] = np.tile(b, reps)
        return r

    w1 = stride1_slabs(p["ct1_w"], 4, 7, wc1p, wc2p)     # [:7,:7] crop folded in
    w2 = stride1_slabs(p["ct2_w"], 7, 11, wc2p, wc3p)
    w3 = stride2_row_slabs(p["ct3_w"], 11, 28, wc3p, OUT_W)

    bf16, f32 = jnp.bfloat16, jnp.float32
    return {
        "lin_w": jnp.asarray(lin_w, bf16), "lin_b": jnp.asarray(lin_b, f32),
        "w1": jnp.asarray(w1, bf16), "b1": jnp.asarray(bias_row(p["ct1_b"], 7, wc2p), f32),
        "w2": jnp.asarray(w2, bf16), "b2": jnp.asarray(bias_row(p["ct2_b"], 11, wc3p), f32),
        "w3": jnp.asarray(w3, bf16), "b3": jnp.asarray(bias_row(p["ct3_b"], 56, OUT_W), f32),
    }


# ------------------------------------------------------------------- pure-JAX reference
def _reference_forward(noise, params, hidden_dim):
    hd = hidden_dim
    B = noise.shape[0]
    h = jnp.maximum(noise @ params["lin_w"].T + params["lin_b"], 0.0)
    x = h.reshape(B, 4 * hd, 4, 4)

    def deconv(x, w, b, stride):
        Bn, Cin, H, W = x.shape
        _, Cout, K, _ = w.shape
        Ho, Wo = (H - 1) * stride + K, (W - 1) * stride + K
        out = jnp.zeros((Bn, Cout, Ho, Wo), jnp.float32)
        for kh in range(K):
            for kw in range(K):
                upd = jnp.einsum("bchw,cd->bdhw", x, w[:, :, kh, kw])
                out = out.at[:, :, kh:kh + (H - 1) * stride + 1:stride,
                             kw:kw + (W - 1) * stride + 1:stride].add(upd)
        return out + b[None, :, None, None]

    x = jnp.maximum(deconv(x, params["ct1_w"], params["ct1_b"], 1), 0.0)
    x = x[:, :, :7, :7]
    x = jnp.maximum(deconv(x, params["ct2_w"], params["ct2_b"], 1), 0.0)
    x = jax.nn.sigmoid(deconv(x, params["ct3_w"], params["ct3_b"], 2))
    return x.reshape(B, 28 * 28)


# ----------------------------------------------------------------------------- main
if __name__ == "__main__":
    batch, input_dim, hidden_dim = 2, 32, 16

    key = jax.random.PRNGKey(0)
    k_noise, k_params = jax.random.split(key)
    noise = jax.random.normal(k_noise, (batch, input_dim), jnp.float32)

    params = init_params(k_params, input_dim, hidden_dim)          # PyTorch layout
    kparams = prepare_params(params, hidden_dim)                   # one-time packing

    fwd = jax.jit(functools.partial(mnist_generator_forward, hidden_dim=hidden_dim))
    out = jax.block_until_ready(fwd(noise, kparams))

    assert out.shape == (batch, 784), out.shape
    assert bool(jnp.all(jnp.isfinite(out)))

    ref = _reference_forward(noise, params, hidden_dim)
    err = float(jnp.max(jnp.abs(out - ref)))
    assert err < 2e-2, f"max abs error vs reference: {err}"

    print("KERNEL_OK")
</pallas_src>

<mosaic_0001>
module attributes {stable_mosaic.version = 11 : i64} {
  func.func @kernel(%arg0: i32, %arg1: memref<2x32xf32, #tpu.memory_space<vmem>>, %arg2: memref<32x1024xbf16, #tpu.memory_space<vmem>>, %arg3: memref<1x1024xf32, #tpu.memory_space<vmem>>, %arg4: memref<5x256x256xbf16, #tpu.memory_space<vmem>>, %arg5: memref<1x256xf32, #tpu.memory_space<vmem>>, %arg6: memref<5x256x256xbf16, #tpu.memory_space<vmem>>, %arg7: memref<1x256xf32, #tpu.memory_space<vmem>>, %arg8: memref<4x256x128xbf16, #tpu.memory_space<vmem>>, %arg9: memref<1x128xf32, #tpu.memory_space<vmem>>, %arg10: memref<1x28x128xf32, #tpu.memory_space<vmem>>, %arg11: memref<22x256xbf16, #tpu.memory_space<vmem>>, %arg12: memref<30x256xbf16, #tpu.memory_space<vmem>>, %arg13: memref<34x256xbf16, #tpu.memory_space<vmem>>) attributes {dimension_semantics = [#tpu.dimension_semantics<parallel>], iteration_bounds = array<i64: 1>, scalar_prefetch = 0 : i64, scratch_operands = 3 : i64, tpu.core_type = #tpu.core_type<tc>, window_params = [{transform_indices = @transform_0, window_bounds = array<i64: 2, 32>}, {pipeline_mode = #tpu.pipeline_mode<synchronous>, transform_indices = @transform_1, window_bounds = array<i64: 32, 1024>}, {pipeline_mode = #tpu.pipeline_mode<synchronous>, transform_indices = @transform_2, window_bounds = array<i64: 1, 1024>}, {pipeline_mode = #tpu.pipeline_mode<synchronous>, transform_indices = @transform_3, window_bounds = array<i64: 5, 256, 256>}, {pipeline_mode = #tpu.pipeline_mode<synchronous>, transform_indices = @transform_4, window_bounds = array<i64: 1, 256>}, {pipeline_mode = #tpu.pipeline_mode<synchronous>, transform_indices = @transform_5, window_bounds = array<i64: 5, 256, 256>}, {pipeline_mode = #tpu.pipeline_mode<synchronous>, transform_indices = @transform_6, window_bounds = array<i64: 1, 256>}, {pipeline_mode = #tpu.pipeline_mode<synchronous>, transform_indices = @transform_7, window_bounds = array<i64: 4, 256, 128>}, {pipeline_mode = #tpu.pipeline_mode<synchronous>, transform_indices = @transform_8, window_bounds = array<i64: 1, 128>}, {transform_indices = @transform_9, window_bounds = array<i64: 1, 28, 128>}]} {
    %cst = arith.constant 0.000000e+00 : bf16
    %0 = vector.broadcast %cst : bf16 to vector<8x256xbf16>
    %c0 = arith.constant 0 : index
    %c0_0 = arith.constant 0 : index
    %1 = vector.load %arg11[%c0, %c0_0] : memref<22x256xbf16, #tpu.memory_space<vmem>>, vector<8x256xbf16>
    tpu.vector_store %arg11[%c0, %c0_0], %0 {strides = array<i32>} : memref<22x256xbf16, #tpu.memory_space<vmem>>, vector<8x256xbf16>,
    %cst_1 = arith.constant 0.000000e+00 : bf16
    %2 = vector.broadcast %cst_1 : bf16 to vector<6x256xbf16>
    %c16 = arith.constant 16 : index
    %c0_2 = arith.constant 0 : index
    %3 = vector.load %arg11[%c16, %c0_2] : memref<22x256xbf16, #tpu.memory_space<vmem>>, vector<6x256xbf16>
    tpu.vector_store %arg11[%c16, %c0_2], %2 {strides = array<i32>} : memref<22x256xbf16, #tpu.memory_space<vmem>>, vector<6x256xbf16>,
    %cst_3 = arith.constant 0.000000e+00 : bf16
    %4 = vector.broadcast %cst_3 : bf16 to vector<8x256xbf16>
    %c0_4 = arith.constant 0 : index
    %c0_5 = arith.constant 0 : index
    %5 = vector.load %arg12[%c0_4, %c0_5] : memref<30x256xbf16, #tpu.memory_space<vmem>>, vector<8x256xbf16>
    tpu.vector_store %arg12[%c0_4, %c0_5], %4 {strides = array<i32>} : memref<30x256xbf16, #tpu.memory_space<vmem>>, vector<8x256xbf16>,
    %cst_6 = arith.constant 0.000000e+00 : bf16
    %6 = vector.broadcast %cst_6 : bf16 to vector<8x256xbf16>
    %c22 = arith.constant 22 : index
    %c0_7 = arith.constant 0 : index
    %7 = vector.load %arg12[%c22, %c0_7] : memref<30x256xbf16, #tpu.memory_space<vmem>>, vector<8x256xbf16>
    tpu.vector_store %arg12[%c22, %c0_7], %6 {strides = array<i32>} : memref<30x256xbf16, #tpu.memory_space<vmem>>, vector<8x256xbf16>,
    %cst_8 = arith.constant 0.000000e+00 : bf16
    %8 = vector.broadcast %cst_8 : bf16 to vector<6x256xbf16>
    %c0_9 = arith.constant 0 : index
    %c0_10 = arith.constant 0 : index
    %9 = vector.load %arg13[%c0_9, %c0_10] : memref<34x256xbf16, #tpu.memory_space<vmem>>, vector<6x256xbf16>
    tpu.vector_store %arg13[%c0_9, %c0_10], %8 {strides = array<i32>} : memref<34x256xbf16, #tpu.memory_space<vmem>>, vector<6x256xbf16>,
    %cst_11 = arith.constant 0.000000e+00 : bf16
    %10 = vector.broadcast %cst_11 : bf16 to vector<6x256xbf16>
    %c28 = arith.constant 28 : index
    %c0_12 = arith.constant 0 : index
    %11 = vector.load %arg13[%c28, %c0_12] : memref<34x256xbf16, #tpu.memory_space<vmem>>, vector<6x256xbf16>
    tpu.vector_store %arg13[%c28, %c0_12], %10 {strides = array<i32>} : memref<34x256xbf16, #tpu.memory_space<vmem>>, vector<6x256xbf16>,
    %c0_13 = arith.constant 0 : index
    %c0_14 = arith.constant 0 : index
    %12 = vector.load %arg1[%c0_13, %c0_14] : memref<2x32xf32, #tpu.memory_space<vmem>>, vector<2x32xf32>
    %13 = arith.truncf %12 : vector<2x32xf32> to vector<2x32xbf16>
    %c0_15 = arith.constant 0 : index
    %c0_16 = arith.constant 0 : index
    %14 = vector.load %arg2[%c0_15, %c0_16] : memref<32x1024xbf16, #tpu.memory_space<vmem>>, vector<32x1024xbf16>
    %cst_17 = arith.constant dense<0.000000e+00> : vector<2x1024xf32>
    %15 = tpu.matmul %13, %14, %cst_17 {dimension_numbers = #tpu.dot_dimension_numbers<[1], [0], [0], [1], [0, 0, 1, 1], [], []>} : vector<2x32xbf16>, vector<32x1024xbf16>, vector<2x1024xf32> -> vector<2x1024xf32>
    %c0_18 = arith.constant 0 : index
    %c0_19 = arith.constant 0 : index
    %16 = vector.load %arg3[%c0_18, %c0_19] : memref<1x1024xf32, #tpu.memory_space<vmem>>, vector<1x1024xf32>
    %17 = vector.broadcast %16 : vector<1x1024xf32> to vector<2x1024xf32>
    %18 = arith.addf %15, %17 : vector<2x1024xf32>
    %cst_20 = arith.constant 0.000000e+00 : f32
    %19 = vector.broadcast %cst_20 : f32 to vector<2x1024xf32>
    %20 = arith.maximumf %18, %19 : vector<2x1024xf32>
    %21 = arith.truncf %20 : vector<2x1024xf32> to vector<2x1024xbf16>
    %22 = vector.extract_strided_slice %21 {offsets = [0, 0], sizes = [2, 256], strides = [1, 1]} : vector<2x1024xbf16> to vector<2x256xbf16>
    %c8 = arith.constant 8 : index
    %c0_21 = arith.constant 0 : index
    %23 = vector.load %arg11[%c8, %c0_21] : memref<22x256xbf16, #tpu.memory_space<vmem>>, vector<2x256xbf16>
    tpu.vector_store %arg11[%c8, %c0_21], %22 {strides = array<i32>} : memref<22x256xbf16, #tpu.memory_space<vmem>>, vector<2x256xbf16>,
    %24 = vector.extract_strided_slice %21 {offsets = [0, 256], sizes = [2, 256], strides = [1, 1]} : vector<2x1024xbf16> to vector<2x256xbf16>
    %c10 = arith.constant 10 : index
    %c0_22 = arith.constant 0 : index
    %25 = vector.load %arg11[%c10, %c0_22] : memref<22x256xbf16, #tpu.memory_space<vmem>>, vector<2x256xbf16>
    tpu.vector_store %arg11[%c10, %c0_22], %24 {strides = array<i32>} : memref<22x256xbf16, #tpu.memory_space<vmem>>, vector<2x256xbf16>,
    %26 = vector.extract_strided_slice %21 {offsets = [0, 512], sizes = [2, 256], strides = [1, 1]} : vector<2x1024xbf16> to vector<2x256xbf16>
    %c12 = arith.constant 12 : index
    %c0_23 = arith.constant 0 : index
    %27 = vector.load %arg11[%c12, %c0_23] : memref<22x256xbf16, #tpu.memory_space<vmem>>, vector<2x256xbf16>
    tpu.vector_store %arg11[%c12, %c0_23], %26 {strides = array<i32>} : memref<22x256xbf16, #tpu.memory_space<vmem>>, vector<2x256xbf16>,
    %28 = vector.extract_strided_slice %21 {offsets = [0, 768], sizes = [2, 256], strides = [1, 1]} : vector<2x1024xbf16> to vector<2x256xbf16>
    %c14 = arith.constant 14 : index
    %c0_24 = arith.constant 0 : index
    %29 = vector.load %arg11[%c14, %c0_24] : memref<22x256xbf16, #tpu.memory_space<vmem>>, vector<2x256xbf16>
    tpu.vector_store %arg11[%c14, %c0_24], %28 {strides = array<i32>} : memref<22x256xbf16, #tpu.memory_space<vmem>>, vector<2x256xbf16>,
    %c0_25 = arith.constant 0 : index
    %c0_26 = arith.constant 0 : index
    %30 = vector.load %arg11[%c0_25, %c0_26] : memref<22x256xbf16, #tpu.memory_space<vmem>>, vector<14x256xbf16>
    %c0_27 = arith.constant 0 : index
    %c0_28 = arith.constant 0 : index
    %c0_29 = arith.constant 0 : index
    %31 = vector.load %arg4[%c0_27, %c0_28, %c0_29] : memref<5x256x256xbf16, #tpu.memory_space<vmem>>, vector<1x256x256xbf16>
    %32 = vector.shape_cast %31 : vector<1x256x256xbf16> to vector<256x256xbf16>
    %cst_30 = arith.constant dense<0.000000e+00> : vector<14x256xf32>
    %33 = tpu.matmul %30, %32, %cst_30 {dimension_numbers = #tpu.dot_dimension_numbers<[1], [0], [0], [1], [0, 0, 1, 1], [], []>} : vector<14x256xbf16>, vector<256x256xbf16>, vector<14x256xf32> -> vector<14x256xf32>
    %c2 = arith.constant 2 : index
    %c0_31 = arith.constant 0 : index
    %34 = vector.load %arg11[%c2, %c0_31] : memref<22x256xbf16, #tpu.memory_space<vmem>>, vector<14x256xbf16>
    %c1 = arith.constant 1 : index
    %c0_32 = arith.constant 0 : index
    %c0_33 = arith.constant 0 : index
    %35 = vector.load %arg4[%c1, %c0_32, %c0_33] : memref<5x256x256xbf16, #tpu.memory_space<vmem>>, vector<1x256x256xbf16>
    %36 = vector.shape_cast %35 : vector<1x256x256xbf16> to vector<256x256xbf16>
    %cst_34 = arith.constant dense<0.000000e+00> : vector<14x256xf32>
    %37 = tpu.matmul %34, %36, %cst_34 {dimension_numbers = #tpu.dot_dimension_numbers<[1], [0], [0], [1], [0, 0, 1, 1], [], []>} : vector<14x256xbf16>, vector<256x256xbf16>, vector<14x256xf32> -> vector<14x256xf32>
    %38 = arith.addf %33, %37 : vector<14x256xf32>
    %c4 = arith.constant 4 : index
    %c0_35 = arith.constant 0 : index
    %39 = vector.load %arg11[%c4, %c0_35] : memref<22x256xbf16, #tpu.memory_space<vmem>>, vector<14x256xbf16>
    %c2_36 = arith.constant 2 : index
    %c0_37 = arith.constant 0 : index
    %c0_38 = arith.constant 0 : index
    %40 = vector.load %arg4[%c2_36, %c0_37, %c0_38] : memref<5x256x256xbf16, #tpu.memory_space<vmem>>, vector<1x256x256xbf16>
    %41 = vector.shape_cast %40 : vector<1x256x256xbf16> to vector<256x256xbf16>
    %cst_39 = arith.constant dense<0.000000e+00> : vector<14x256xf32>
    %42 = tpu.matmul %39, %41, %cst_39 {dimension_numbers = #tpu.dot_dimension_numbers<[1], [0], [0], [1], [0, 0, 1, 1], [], []>} : vector<14x256xbf16>, vector<256x256xbf16>, vector<14x256xf32> -> vector<14x256xf32>
    %43 = arith.addf %38, %42 : vector<14x256xf32>
    %c6 = arith.constant 6 : index
    %c0_40 = arith.constant 0 : index
    %44 = vector.load %arg11[%c6, %c0_40] : memref<22x256xbf16, #tpu.memory_space<vmem>>, vector<14x256xbf16>
    %c3 = arith.constant 3 : index
    %c0_41 = arith.constant 0 : index
    %c0_42 = arith.constant 0 : index
    %45 = vector.load %arg4[%c3, %c0_41, %c0_42] : memref<5x256x256xbf16, #tpu.memory_space<vmem>>, vector<1x256x256xbf16>
    %46 = vector.shape_cast %45 : vector<1x256x256xbf16> to vector<256x256xbf16>
    %cst_43 = arith.constant dense<0.000000e+00> : vector<14x256xf32>
    %47 = tpu.matmul %44, %46, %cst_43 {dimension_numbers = #tpu.dot_dimension_numbers<[1], [0], [0], [1], [0, 0, 1, 1], [], []>} : vector<14x256xbf16>, vector<256x256xbf16>, vector<14x256xf32> -> vector<14x256xf32>
    %48 = arith.addf %43, %47 : vector<14x256xf32>
    %c8_44 = arith.constant 8 : index
    %c0_45 = arith.constant 0 : index
    %49 = vector.load %arg11[%c8_44, %c0_45] : memref<22x256xbf16, #tpu.memory_space<vmem>>, vector<14x256xbf16>
    %c4_46 = arith.constant 4 : index
    %c0_47 = arith.constant 0 : index
    %c0_48 = arith.constant 0 : index
    %50 = vector.load %arg4[%c4_46, %c0_47, %c0_48] : memref<5x256x256xbf16, #tpu.memory_space<vmem>>, vector<1x256x256xbf16>
    %51 = vector.shape_cast %50 : vector<1x256x256xbf16> to vector<256x256xbf16>
    %cst_49 = arith.constant dense<0.000000e+00> : vector<14x256xf32>
    %52 = tpu.matmul %49, %51, %cst_49 {dimension_numbers = #tpu.dot_dimension_numbers<[1], [0], [0], [1], [0, 0, 1, 1], [], []>} : vector<14x256xbf16>, vector<256x256xbf16>, vector<14x256xf32> -> vector<14x256xf32>
    %53 = arith.addf %48, %52 : vector<14x256xf32>
    %c0_50 = arith.constant 0 : index
    %c0_51 = arith.constant 0 : index
    %54 = vector.load %arg5[%c0_50, %c0_51] : memref<1x256xf32, #tpu.memory_space<vmem>>, vector<1x256xf32>
    %55 = vector.broadcast %54 : vector<1x256xf32> to vector<14x256xf32>
    %56 = arith.addf %53, %55 : vector<14x256xf32>
    %cst_52 = arith.constant 0.000000e+00 : f32
    %57 = vector.broadcast %cst_52 : f32 to vector<14x256xf32>
    %58 = arith.maximumf %56, %57 : vector<14x256xf32>
    %59 = arith.truncf %58 : vector<14x256xf32> to vector<14x256xbf16>
    %c8_53 = arith.constant 8 : index
    %c0_54 = arith.constant 0 : index
    %60 = vector.load %arg12[%c8_53, %c0_54] : memref<30x256xbf16, #tpu.memory_space<vmem>>, vector<14x256xbf16>
    tpu.vector_store %arg12[%c8_53, %c0_54], %59 {strides = array<i32>} : memref<30x256xbf16, #tpu.memory_space<vmem>>, vector<14x256xbf16>,
    %c0_55 = arith.constant 0 : index
    %c0_56 = arith.constant 0 : index
    %61 = vector.load %arg12[%c0_55, %c0_56] : memref<30x256xbf16, #tpu.memory_space<vmem>>, vector<22x256xbf16>
    %c0_57 = arith.constant 0 : index
    %c0_58 = arith.constant 0 : index
    %c0_59 = arith.constant 0 : index
    %62 = vector.load %arg6[%c0_57, %c0_58, %c0_59] : memref<5x256x256xbf16, #tpu.memory_space<vmem>>, vector<1x256x256xbf16>
    %63 = vector.shape_cast %62 : vector<1x256x256xbf16> to vector<256x256xbf16>
    %cst_60 = arith.constant dense<0.000000e+00> : vector<22x256xf32>
    %64 = tpu.matmul %61, %63, %cst_60 {dimension_numbers = #tpu.dot_dimension_numbers<[1], [0], [0], [1], [0, 0, 1, 1], [], []>} : vector<22x256xbf16>, vector<256x256xbf16>, vector<22x256xf32> -> vector<22x256xf32>
    %c2_61 = arith.constant 2 : index
    %c0_62 = arith.constant 0 : index
    %65 = vector.load %arg12[%c2_61, %c0_62] : memref<30x256xbf16, #tpu.memory_space<vmem>>, vector<22x256xbf16>
    %c1_63 = arith.constant 1 : index
    %c0_64 = arith.constant 0 : index
    %c0_65 = arith.constant 0 : index
    %66 = vector.load %arg6[%c1_63, %c0_64, %c0_65] : memref<5x256x256xbf16, #tpu.memory_space<vmem>>, vector<1x256x256xbf16>
    %67 = vector.shape_cast %66 : vector<1x256x256xbf16> to vector<256x256xbf16>
    %cst_66 = arith.constant dense<0.000000e+00> : vector<22x256xf32>
    %68 = tpu.matmul %65, %67, %cst_66 {dimension_numbers = #tpu.dot_dimension_numbers<[1], [0], [0], [1], [0, 0, 1, 1], [], []>} : vector<22x256xbf16>, vector<256x256xbf16>, vector<22x256xf32> -> vector<22x256xf32>
    %69 = arith.addf %64, %68 : vector<22x256xf32>
    %c4_67 = arith.constant 4 : index
    %c0_68 = arith.constant 0 : index
    %70 = vector.load %arg12[%c4_67, %c0_68] : memref<30x256xbf16, #tpu.memory_space<vmem>>, vector<22x256xbf16>
    %c2_69 = arith.constant 2 : index
    %c0_70 = arith.constant 0 : index
    %c0_71 = arith.constant 0 : index
    %71 = vector.load %arg6[%c2_69, %c0_70, %c0_71] : memref<5x256x256xbf16, #tpu.memory_space<vmem>>, vector<1x256x256xbf16>
    %72 = vector.shape_cast %71 : vector<1x256x256xbf16> to vector<256x256xbf16>
    %cst_72 = arith.constant dense<0.000000e+00> : vector<22x256xf32>
    %73 = tpu.matmul %70, %72, %cst_72 {dimension_numbers = #tpu.dot_dimension_numbers<[1], [0], [0], [1], [0, 0, 1, 1], [], []>} : vector<22x256xbf16>, vector<256x256xbf16>, vector<22x256xf32> -> vector<22x256xf32>
    %74 = arith.addf %69, %73 : vector<22x256xf32>
    %c6_73 = arith.constant 6 : index
    %c0_74 = arith.constant 0 : index
    %75 = vector.load %arg12[%c6_73, %c0_74] : memref<30x256xbf16, #tpu.memory_space<vmem>>, vector<22x256xbf16>
    %c3_75 = arith.constant 3 : index
    %c0_76 = arith.constant 0 : index
    %c0_77 = arith.constant 0 : index
    %76 = vector.load %arg6[%c3_75, %c0_76, %c0_77] : memref<5x256x256xbf16, #tpu.memory_space<vmem>>, vector<1x256x256xbf16>
    %77 = vector.shape_cast %76 : vector<1x256x256xbf16> to vector<256x256xbf16>
    %cst_78 = arith.constant dense<0.000000e+00> : vector<22x256xf32>
    %78 = tpu.matmul %75, %77, %cst_78 {dimension_numbers = #tpu.dot_dimension_numbers<[1], [0], [0], [1], [0, 0, 1, 1], [], []>} : vector<22x256xbf16>, vector<256x256xbf16>, vector<22x256xf32> -> vector<22x256xf32>
    %79 = arith.addf %74, %78 : vector<22x256xf32>
    %c8_79 = arith.constant 8 : index
    %c0_80 = arith.constant 0 : index
    %80 = vector.load %arg12[%c8_79, %c0_80] : memref<30x256xbf16, #tpu.memory_space<vmem>>, vector<22x256xbf16>
    %c4_81 = arith.constant 4 : index
    %c0_82 = arith.constant 0 : index
    %c0_83 = arith.constant 0 : index
    %81 = vector.load %arg6[%c4_81, %c0_82, %c0_83] : memref<5x256x256xbf16, #tpu.memory_space<vmem>>, vector<1x256x256xbf16>
    %82 = vector.shape_cast %81 : vector<1x256x256xbf16> to vector<256x256xbf16>
    %cst_84 = arith.constant dense<0.000000e+00> : vector<22x256xf32>
    %83 = tpu.matmul %80, %82, %cst_84 {dimension_numbers = #tpu.dot_dimension_numbers<[1], [0], [0], [1], [0, 0, 1, 1], [], []>} : vector<22x256xbf16>, vector<256x256xbf16>, vector<22x256xf32> -> vector<22x256xf32>
    %84 = arith.addf %79, %83 : vector<22x256xf32>
    %c0_85 = arith.constant 0 : index
    %c0_86 = arith.constant 0 : index
    %85 = vector.load %arg7[%c0_85, %c0_86] : memref<1x256xf32, #tpu.memory_space<vmem>>, vector<1x256xf32>
    %86 = vector.broadcast %85 : vector<1x256xf32> to vector<22x256xf32>
    %87 = arith.addf %84, %86 : vector<22x256xf32>
    %cst_87 = arith.constant 0.000000e+00 : f32
    %88 = vector.broadcast %cst_87 : f32 to vector<22x256xf32>
    %89 = arith.maximumf %87, %88 : vector<22x256xf32>
    %90 = arith.truncf %89 : vector<22x256xf32> to vector<22x256xbf16>
    %c6_88 = arith.constant 6 : index
    %c0_89 = arith.constant 0 : index
    %91 = vector.load %arg13[%c6_88, %c0_89] : memref<34x256xbf16, #tpu.memory_space<vmem>>, vector<22x256xbf16>
    tpu.vector_store %arg13[%c6_88, %c0_89], %90 {strides = array<i32>} : memref<34x256xbf16, #tpu.memory_space<vmem>>, vector<22x256xbf16>,
    %c0_90 = arith.constant 0 : index
    %c0_91 = arith.constant 0 : index
    %92 = vector.load %arg13[%c0_90, %c0_91] : memref<34x256xbf16, #tpu.memory_space<vmem>>, vector<28x256xbf16>
    %c0_92 = arith.constant 0 : index
    %c0_93 = arith.constant 0 : index
    %c0_94 = arith.constant 0 : index
    %93 = vector.load %arg8[%c0_92, %c0_93, %c0_94] : memref<4x256x128xbf16, #tpu.memory_space<vmem>>, vector<1x256x128xbf16>
    %94 = vector.shape_cast %93 : vector<1x256x128xbf16> to vector<256x128xbf16>
    %cst_95 = arith.constant dense<0.000000e+00> : vector<28x128xf32>
    %95 = tpu.matmul %92, %94, %cst_95 {dimension_numbers = #tpu.dot_dimension_numbers<[1], [0], [0], [1], [0, 0, 1, 1], [], []>} : vector<28x256xbf16>, vector<256x128xbf16>, vector<28x128xf32> -> vector<28x128xf32>
    %c2_96 = arith.constant 2 : index
    %c0_97 = arith.constant 0 : index
    %96 = vector.load %arg13[%c2_96, %c0_97] : memref<34x256xbf16, #tpu.memory_space<vmem>>, vector<28x256xbf16>
    %c1_98 = arith.constant 1 : index
    %c0_99 = arith.constant 0 : index
    %c0_100 = arith.constant 0 : index
    %97 = vector.load %arg8[%c1_98, %c0_99, %c0_100] : memref<4x256x128xbf16, #tpu.memory_space<vmem>>, vector<1x256x128xbf16>
    %98 = vector.shape_cast %97 : vector<1x256x128xbf16> to vector<256x128xbf16>
    %cst_101 = arith.constant dense<0.000000e+00> : vector<28x128xf32>
    %99 = tpu.matmul %96, %98, %cst_101 {dimension_numbers = #tpu.dot_dimension_numbers<[1], [0], [0], [1], [0, 0, 1, 1], [], []>} : vector<28x256xbf16>, vector<256x128xbf16>, vector<28x128xf32> -> vector<28x128xf32>
    %100 = arith.addf %95, %99 : vector<28x128xf32>
    %c4_102 = arith.constant 4 : index
    %c0_103 = arith.constant 0 : index
    %101 = vector.load %arg13[%c4_102, %c0_103] : memref<34x256xbf16, #tpu.memory_space<vmem>>, vector<28x256xbf16>
    %c2_104 = arith.constant 2 : index
    %c0_105 = arith.constant 0 : index
    %c0_106 = arith.constant 0 : index
    %102 = vector.load %arg8[%c2_104, %c0_105, %c0_106] : memref<4x256x128xbf16, #tpu.memory_space<vmem>>, vector<1x256x128xbf16>
    %103 = vector.shape_cast %102 : vector<1x256x128xbf16> to vector<256x128xbf16>
    %cst_107 = arith.constant dense<0.000000e+00> : vector<28x128xf32>
    %104 = tpu.matmul %101, %103, %cst_107 {dimension_numbers = #tpu.dot_dimension_numbers<[1], [0], [0], [1], [0, 0, 1, 1], [], []>} : vector<28x256xbf16>, vector<256x128xbf16>, vector<28x128xf32> -> vector<28x128xf32>
    %105 = arith.addf %100, %104 : vector<28x128xf32>
    %c6_108 = arith.constant 6 : index
    %c0_109 = arith.constant 0 : index
    %106 = vector.load %arg13[%c6_108, %c0_109] : memref<34x256xbf16, #tpu.memory_space<vmem>>, vector<28x256xbf16>
    %c3_110 = arith.constant 3 : index
    %c0_111 = arith.constant 0 : index
    %c0_112 = arith.constant 0 : index
    %107 = vector.load %arg8[%c3_110, %c0_111, %c0_112] : memref<4x256x128xbf16, #tpu.memory_space<vmem>>, vector<1x256x128xbf16>
    %108 = vector.shape_cast %107 : vector<1x256x128xbf16> to vector<256x128xbf16>
    %cst_113 = arith.constant dense<0.000000e+00> : vector<28x128xf32>
    %109 = tpu.matmul %106, %108, %cst_113 {dimension_numbers = #tpu.dot_dimension_numbers<[1], [0], [0], [1], [0, 0, 1, 1], [], []>} : vector<28x256xbf16>, vector<256x128xbf16>, vector<28x128xf32> -> vector<28x128xf32>
    %110 = arith.addf %105, %109 : vector<28x128xf32>
    %c0_114 = arith.constant 0 : index
    %c0_115 = arith.constant 0 : index
    %111 = vector.load %arg9[%c0_114, %c0_115] : memref<1x128xf32, #tpu.memory_space<vmem>>, vector<1x128xf32>
    %112 = vector.broadcast %111 : vector<1x128xf32> to vector<28x128xf32>
    %113 = arith.addf %110, %112 : vector<28x128xf32>
    %114 = arith.negf %113 : vector<28x128xf32>
    %115 = math.exp %114 : vector<28x128xf32>
    %cst_116 = arith.constant 1.000000e+00 : f32
    %116 = vector.broadcast %cst_116 : f32 to vector<28x128xf32>
    %117 = arith.addf %116, %115 : vector<28x128xf32>
    %118 = arith.divf %116, %117 : vector<28x128xf32>
    %c0_117 = arith.constant 0 : index
    %c0_118 = arith.constant 0 : index
    %c0_119 = arith.constant 0 : index
    %119 = vector.load %arg10[%c0_117, %c0_118, %c0_119] : memref<1x28x128xf32, #tpu.memory_space<vmem>>, vector<1x28x128xf32>
    %120 = vector.shape_cast %119 : vector<1x28x128xf32> to vector<28x128xf32>
    %121 = vector.shape_cast %118 : vector<28x128xf32> to vector<1x28x128xf32>
    tpu.vector_store %arg10[%c0_117, %c0_118, %c0_119], %121 {strides = array<i32>} : memref<1x28x128xf32, #tpu.memory_space<vmem>>, vector<1x28x128xf32>,
    return
  }
  func.func @transform_0(%arg0: i32) -> (i32, i32) {
    %c0_i32 = arith.constant 0 : i32
    %c0_i32_0 = arith.constant 0 : i32
    return %arg0, %c0_i32 : i32, i32
  }
  func.func @transform_1(%arg0: i32) -> (i32, i32) {
    %c0_i32 = arith.constant 0 : i32
    %c0_i32_0 = arith.constant 0 : i32
    %c0_i32_1 = arith.constant 0 : i32
    return %c0_i32, %c0_i32_0 : i32, i32
  }
  func.func @transform_2(%arg0: i32) -> (i32, i32) {
    %c0_i32 = arith.constant 0 : i32
    %c0_i32_0 = arith.constant 0 : i32
    %c0_i32_1 = arith.constant 0 : i32
    return %c0_i32, %c0_i32_0 : i32, i32
  }
  func.func @transform_3(%arg0: i32) -> (i32, i32, i32) {
    %c0_i32 = arith.constant 0 : i32
    %c0_i32_0 = arith.constant 0 : i32
    %c0_i32_1 = arith.constant 0 : i32
    %c0_i32_2 = arith.constant 0 : i32
    return %c0_i32, %c0_i32_0, %c0_i32_1 : i32, i32, i32
  }
  func.func @transform_4(%arg0: i32) -> (i32, i32) {
    %c0_i32 = arith.constant 0 : i32
    %c0_i32_0 = arith.constant 0 : i32
    %c0_i32_1 = arith.constant 0 : i32
    return %c0_i32, %c0_i32_0 : i32, i32
  }
  func.func @transform_5(%arg0: i32) -> (i32, i32, i32) {
    %c0_i32 = arith.constant 0 : i32
    %c0_i32_0 = arith.constant 0 : i32
    %c0_i32_1 = arith.constant 0 : i32
    %c0_i32_2 = arith.constant 0 : i32
    return %c0_i32, %c0_i32_0, %c0_i32_1 : i32, i32, i32
  }
  func.func @transform_6(%arg0: i32) -> (i32, i32) {
    %c0_i32 = arith.constant 0 : i32
    %c0_i32_0 = arith.constant 0 : i32
    %c0_i32_1 = arith.constant 0 : i32
    return %c0_i32, %c0_i32_0 : i32, i32
  }
  func.func @transform_7(%arg0: i32) -> (i32, i32, i32) {
    %c0_i32 = arith.constant 0 : i32
    %c0_i32_0 = arith.constant 0 : i32
    %c0_i32_1 = arith.constant 0 : i32
    %c0_i32_2 = arith.constant 0 : i32
    return %c0_i32, %c0_i32_0, %c0_i32_1 : i32, i32, i32
  }
  func.func @transform_8(%arg0: i32) -> (i32, i32) {
    %c0_i32 = arith.constant 0 : i32
    %c0_i32_0 = arith.constant 0 : i32
    %c0_i32_1 = arith.constant 0 : i32
    return %c0_i32, %c0_i32_0 : i32, i32
  }
  func.func @transform_9(%arg0: i32) -> (i32, i32, i32) {
    %c0_i32 = arith.constant 0 : i32
    %c0_i32_0 = arith.constant 0 : i32
    %c0_i32_1 = arith.constant 0 : i32
    return %arg0, %c0_i32, %c0_i32_0 : i32, i32, i32
  }
}

</mosaic_0001>

<bundles_post_ra>
// kernel: mnist_generator_forward.1
= control target key start
LH: loop header
LB: loop body
LE: loop exit
PB: predicated region body
PF: predicated region fallthrough
CT: control target
= control target key end

     0   :  { %14 = vsyncpa [#allocation6], 0  ;;  %s5706_s0 = inlined_call_operand.hbm [shape: f32[2,32], index: 0, kind: input, shape index: {}]   ;;  %s5707_s1 = inlined_call_operand.hbm [shape: bf16[32,1024], index: 1, kind: input, shape index: {}]   ;;  %s5708_s2 = inlined_call_operand.vmem [shape: f32[1,1024], index: 2, kind: input, shape index: {}]   ;;  %s5709_s3 = inlined_call_operand.hbm [shape: bf16[5,256,256], index: 3, kind: input, shape index: {}]   ;;  %s5710_s4 = inlined_call_operand.vmem [shape: f32[1,256], index: 4, kind: input, shape index: {}]   ;;  %s5711_s5 = inlined_call_operand.hbm [shape: bf16[5,256,256], index: 5, kind: input, shape index: {}]   ;;  %s5712_s6 = inlined_call_operand.vmem [shape: f32[1,256], index: 6, kind: input, shape index: {}]   ;;  %s5713_s7 = inlined_call_operand.hbm [shape: bf16[4,256,128], index: 7, kind: input, shape index: {}]   ;;  %s5714_s8 = inlined_call_operand.vmem [shape: f32[1,128], index: 8, kind: input, shape index: {}]   ;;  %s5715_s9 = inlined_call_operand.vmem [shape: f32[1,28,128], index: 9, kind: output, shape index: {}]  }
   0x1   :  { %15 = vsyncpa [#allocation8], 0 }
   0x2   :  { %16 = vsyncpa [#allocation11], 0  ;;  %s5380_s30 = smov [#allocation7]   ;;  %s5264_s13 = scalar_lea.hbm %s5707_s1, 2048 }
   0x3   :  { %s32_s10 = sshll.u32 %s5380_s30, 4  ;;  %p5265_p0 = scmp.ne.s32.totalorder %s5707_s1, %s5264_s13  ;;  %s33_s10 = int_to_ptr.vmem [resolvable:$true] %s32_s10 }
   0x4   :  { %p5268_p1 = scmp.lt.u32.totalorder %s5264_s13, %s5707_s1 }
   0x6   :  { %p5270_p2 = pnand %p5268_p1, %p5265_p0 }
   0x8   :  { %5273 = shalt.err (!%p5270_p2)
}
   0x9   :  { %s5274_s18 = scalar_lea.vmem %s33_s10, 2048  ;;  %p5279_p4 = scmp.lt.s32.totalorder %s33_s10, %s33_s10 }
   0xa   :  { %p5275_p3 = scmp.ne.s32.totalorder %s33_s10, %s5274_s18  ;;  %p5280_p5 = scmp.lt.s32.totalorder %s5274_s18, %s5274_s18 }
   0xc   :  { %p5281_p6 = por %p5280_p5, %p5279_p4 }
   0xe   :  { %p5282_p7 = pnand %p5281_p6, %p5275_p3 }
  0x10   :  { %5285 = shalt.err (!%p5282_p7)
}
  0x11   :  { %s5381_s19 = smov 512   ;;  %s5382_s20 = smov 32  }
  0x12   :  { %38 = dma.hbm_to_vmem [thread:$0]  %s5707_s1, 2048, %s33_s10, [#allocation8], %s5381_s19, %s5381_s19, %s5382_s20  }
  0x13   :  { %s5383_s23 = smov [#allocation10]   ;;  %s5384_s25 = smov [#allocation5]  }
  0x14   :  { %s60_s24 = sshll.u32 %s5383_s23, 4  ;;  %s23_s26 = sshll.u32 %s5384_s25, 4  ;;  %s61_s24 = int_to_ptr.vmem [resolvable:$true] %s60_s24  ;;  %s24_s26 = int_to_ptr.vmem [resolvable:$true] %s23_s26 }
  0x15   :  { %s5286_s29 = scalar_lea.hbm %s5711_s5, 20480 }
  0x16   :  { %p5287_p8 = scmp.ne.s32.totalorder %s5711_s5, %s5286_s29  ;;  %p5290_p9 = scmp.lt.u32.totalorder %s5286_s29, %s5711_s5 }
  0x18   :  { %p5292_p10 = pnand %p5290_p9, %p5287_p8 }
  0x1a   :  { %5295 = shalt.err (!%p5292_p10)
}
  0x1b   :  { %s5296_s1 = scalar_lea.vmem %s61_s24, 20480  ;;  %p5301_p12 = scmp.lt.s32.totalorder %s61_s24, %s61_s24 }
  0x1c   :  { %p5297_p11 = scmp.ne.s32.totalorder %s61_s24, %s5296_s1  ;;  %p5302_p13 = scmp.lt.s32.totalorder %s5296_s1, %s5296_s1 }
  0x1e   :  { %p5303_p0 = por %p5302_p13, %p5301_p12 }
  0x20   :  { %p5304_p1 = pnand %p5303_p0, %p5297_p11 }
  0x22   :  { %5307 = shalt.err (!%p5304_p1)
}
  0x23   :  { %s5385_s10 = smov 128   ;;  %s5386_s14 = smov 8  }
  0x24   :  { %66 = dma.hbm_to_vmem [thread:$0]  %s5711_s5, 20480, %s61_s24, [#allocation11], %s5385_s10, %s5385_s10, %s5386_s14  }
  0x25   :  { %s5308_s19 = scalar_lea.hbm %s5706_s0, 32 }
  0x26   :  { %p5309_p2 = scmp.ne.s32.totalorder %s5706_s0, %s5308_s19  ;;  %p5312_p3 = scmp.lt.u32.totalorder %s5308_s19, %s5706_s0 }
  0x28   :  { %p5314_p4 = pnand %p5312_p3, %p5309_p2 }
  0x2a   :  { %5317 = shalt.err (!%p5314_p4)
}
  0x2b   :  { %s5318_s25 = scalar_lea.vmem %s24_s26, 32  ;;  %p5323_p6 = scmp.lt.s32.totalorder %s24_s26, %s24_s26 }
  0x2c   :  { %p5319_p5 = scmp.ne.s32.totalorder %s24_s26, %s5318_s25  ;;  %p5324_p7 = scmp.lt.s32.totalorder %s5318_s25, %s5318_s25 }
  0x2e   :  { %p5325_p8 = por %p5324_p7, %p5323_p6 }
  0x30   :  { %p5326_p9 = pnand %p5325_p8, %p5319_p5 }
  0x32   :  { %5329 = shalt.err (!%p5326_p9)
}
  0x33   :  { %26 = dma.hbm_to_vmem [thread:$0]  %s5706_s0, 32, %s24_s26, [#allocation6]  }
  0x34   :  { %s5387_s27 = smov [#allocation9]   ;;  %s5388_s29 = smov [#allocation12]  }
  0x35   :  { %s46_s28 = sshll.u32 %s5387_s27, 4  ;;  %s74_s30 = sshll.u32 %s5388_s29, 4  ;;  %s47_s28 = int_to_ptr.vmem [resolvable:$true] %s46_s28  ;;  %s75_s30 = int_to_ptr.vmem [resolvable:$true] %s74_s30 }
  0x36   :  { %s5330_s13 = scalar_lea.hbm %s5709_s3, 20480 }
  0x37   :  { %p5331_p10 = scmp.ne.s32.totalorder %s5709_s3, %s5330_s13  ;;  %p5334_p11 = scmp.lt.u32.totalorder %s5330_s13, %s5709_s3 }
  0x39   :  { %p5336_p12 = pnand %p5334_p11, %p5331_p10 }
  0x3b   :  { %5339 = shalt.err (!%p5336_p12)
}
  0x3c   :  { %s5340_s0 = scalar_lea.vmem %s47_s28, 20480  ;;  %p5345_p0 = scmp.lt.s32.totalorder %s47_s28, %s47_s28 }
  0x3d   :  { %p5341_p13 = scmp.ne.s32.totalorder %s47_s28, %s5340_s0  ;;  %p5346_p1 = scmp.lt.s32.totalorder %s5340_s0, %s5340_s0 }
  0x3f   :  { %p5347_p2 = por %p5346_p1, %p5345_p0 }
  0x41   :  { %p5348_p3 = pnand %p5347_p2, %p5341_p13 }
  0x43   :  { %5351 = shalt.err (!%p5348_p3)
}
  0x44   :  { %52 = dma.hbm_to_vmem [thread:$0]  %s5709_s3, 20480, %s47_s28, [#allocation8], %s5385_s10, %s5385_s10, %s5386_s14  }
  0x45   :  { %s5352_s21 = scalar_lea.hbm %s5713_s7, 8192 }
  0x46   :  { %p5353_p4 = scmp.ne.s32.totalorder %s5713_s7, %s5352_s21  ;;  %p5356_p5 = scmp.lt.u32.totalorder %s5352_s21, %s5713_s7 }
  0x48   :  { %p5358_p6 = pnand %p5356_p5, %p5353_p4 }
  0x4a   :  { %5361 = shalt.err (!%p5358_p6)
}
  0x4b   :  { %s5362_s24 = scalar_lea.vmem %s75_s30, 8192  ;;  %p5367_p8 = scmp.lt.s32.totalorder %s75_s30, %s75_s30 }
  0x4c   :  { %p5363_p7 = scmp.ne.s32.totalorder %s75_s30, %s5362_s24  ;;  %p5368_p9 = scmp.lt.s32.totalorder %s5362_s24, %s5362_s24 }
  0x4e   :  { %p5369_p10 = por %p5368_p9, %p5367_p8 }
  0x50   :  { %p5370_p11 = pnand %p5369_p10, %p5363_p7 }
  0x52   :  { %5373 = shalt.err (!%p5370_p11)
}
  0x53   :  { %s5389_s3 = smov 64   ;;  %s5390_s10 = smov 4  }
  0x54   :  { %80 = dma.hbm_to_vmem [thread:$0]  %s5713_s7, 8192, %s75_s30, [#allocation11], %s5389_s3, %s5389_s3, %s5390_s10  }
  0x55   :  { %5374 = dma.done.wait [#allocation6], 32  }
  0x56   :  { %5375 = vsyncadd [#allocation6], 4294967264 }
  0x57   :  { %5376 = dma.done.wait [#allocation8], 22528  }
  0x58   :  { %5377 = vsyncadd [#allocation8], 4294944768 }
  0x59   :  { %5378 = dma.done.wait [#allocation11], 28672  }
  0x5a   :  { %5379 = vsyncadd [#allocation11], 4294938624  ;;  %v5391_v0 = vmov 0   ;;  %v109_v1 = vld [vmem:[#allocation7] sm:$0xff]  ;;  %v110_v3 = vld [vmem:[#allocation7 + $0x8] sm:$0xff]  ;;  %vm247_vm0 = vcmask 261120  }
  0x5b   :  { %283 = vmatprep.mubr.bf16.mxu0 %v5391_v0  ;;  %99 = vst [vmem:[#allocation2] sm:$0xff] %v5391_v0  ;;  %100 = vst [vmem:[#allocation2 + $0x10] sm:$0x77] %v5391_v0  ;;  %324 = vmatprep.mubr.bf16.mxu1 %v5391_v0  ;;  %v113_v2 = vld [vmem:[#allocation7 + $0x20] sm:$0xff]  ;;  %v114_v5 = vld [vmem:[#allocation7 + $0x28] sm:$0xff]  ;;  %vm1008_vm1 = vcmask 1045504  }
  0x5c   :  { %101 = vst [vmem:[#allocation3] sm:$0xff] %v5391_v0  ;;  %102 = vst [vmem:[#allocation3 + $0x10] sm:$0x88] %v5391_v0  ;;  %v4045_v4 = vcombine.high %v109_v1, %v113_v2  ;;  %v4044_v6 = vcombine.low %v109_v1, %v113_v2  ;;  %v117_v7 = vld [vmem:[#allocation7 + $0x40] sm:$0xff]  ;;  %v4047_v9 = vcombine.high %v110_v3, %v114_v5  ;;  %v118_v12 = vld [vmem:[#allocation7 + $0x48] sm:$0xff]  ;;  %vm1269_vm2 = vcmask 1044480  }
  0x5d   :  { %103 = vst [vmem:[#allocation3 + $0x18] sm:$0x77] %v5391_v0  ;;  %104 = vst [vmem:[#allocation4] sm:$0x77] %v5391_v0  ;;  %v121_v8 = vld [vmem:[#allocation7 + $0x60] sm:$0xff]  ;;  %v4046_v10 = vcombine.low %v110_v3, %v114_v5  ;;  %v122_v13 = vld [vmem:[#allocation7 + $0x68] sm:$0xff] }
  0x5e   :  { %105 = vst [vmem:[#allocation4 + $0x18] sm:$0xcc] %v5391_v0  ;;  %106 = vst [vmem:[#allocation4 + $0x20] sm:$0x11] %v5391_v0  ;;  %v4053_v11 = vcombine.high %v117_v7, %v121_v8  ;;  %251 = vmatprep.subr.bf16.mxu0 %v4045_v4  ;;  %v4055_v14 = vcombine.high %v118_v12, %v122_v13  ;;  %v111_v15 = vld [vmem:[#allocation7 + $0x10] sm:$0xff]  ;;  %v112_v17 = vld [vmem:[#allocation7 + $0x18] sm:$0xff]  ;;  %292 = vmatprep.subr.bf16.mxu1 %v4047_v9  ;;  %v127_v4 = vlaneseq }
  0x5f   :  { %v115_v16 = vld [vmem:[#allocation7 + $0x30] sm:$0xff]  ;;  %252 = vmatpush1.bf16.msra.mxu0 %v4044_v6  ;;  %v4052_v18 = vcombine.low %v117_v7, %v121_v8  ;;  %v107_v19 = vld [vmem:[#allocation5] sm:$0x3]  ;;  %293 = vmatpush1.bf16.msra.mxu1 %v4046_v10  ;;  %v4054_v21 = vcombine.low %v118_v12, %v122_v13  ;;  %v4681_v35 = vld [vmem:[#allocation9 + $0x104] ss:$8 sps:$4 sm:$0xff]   ;;  %vm1850_vm3 = vcmask 1046528  }
  0x60   :  { %v116_v20 = vld [vmem:[#allocation7 + $0x38] sm:$0xff]  ;;  %253 = vmatprep.subr.bf16.mxu0 %v4053_v11  ;;  %v4049_v22 = vcombine.high %v111_v15, %v115_v16  ;;  %v119_v23 = vld [vmem:[#allocation7 + $0x50] sm:$0xff]  ;;  %294 = vmatprep.subr.bf16.mxu1 %v4055_v14  ;;  %v108_v27 = vpack.c.bf16 %v107_v19, %v107_v19  ;;  %v4048_v29 = vcombine.low %v111_v15, %v115_v16  ;;  %v4679_v36 = vld [vmem:[#allocation9 + $0x100] ss:$8 sps:$4 sm:$0xff]   ;;  %v128_v5 = vshrl.u32 %v127_v4, 7 }
  0x61   :  { %v4051_v24 = vcombine.high %v112_v17, %v116_v20  ;;  %v123_v25 = vld [vmem:[#allocation7 + $0x70] sm:$0xff]  ;;  %v120_v26 = vld [vmem:[#allocation7 + $0x58] sm:$0xff]  ;;  %v4050_v30 = vcombine.low %v112_v17, %v116_v20  ;;  %v4687_v39 = vld [vmem:[#allocation9 + $0x124] ss:$8 sps:$4 sm:$0xff]   ;;  %vm3152_vm4 = vcmask 1042432   ;;  %vm3153_vm5 = vcmask 1046532  }
  0x62   :  { %v124_v28 = vld [vmem:[#allocation7 + $0x78] sm:$0xff]  ;;  %v4057_v31 = vcombine.high %v119_v23, %v123_v25  ;;  %v4056_v33 = vcombine.low %v119_v23, %v123_v25  ;;  %v4685_v40 = vld [vmem:[#allocation9 + $0x120] ss:$8 sps:$4 sm:$0xff]   ;;  %v4693_v43 = vld [vmem:[#allocation9 + $0x144] ss:$8 sps:$4 sm:$0xff]   ;;  %v5524_v6 = vsub.s32 0, %v128_v5 }
  0x63   :  { %254 = vmatpush1.bf16.msra.mxu0 %v4052_v18  ;;  %295 = vmatpush1.bf16.msra.mxu1 %v4054_v21  ;;  %v4059_v32 = vcombine.high %v120_v26, %v124_v28  ;;  %v4058_v34 = vcombine.low %v120_v26, %v124_v28  ;;  %v4684_v37 = vld [vmem:[#allocation9 + $0x114] ss:$8 sps:$4 sm:$0xff]   ;;  %v4682_v38 = vld [vmem:[#allocation9 + $0x110] ss:$8 sps:$4 sm:$0xff]   ;;  %v4691_v44 = vld [vmem:[#allocation9 + $0x140] ss:$8 sps:$4 sm:$0xff]  }
  0x64   :  { %333 = vmatprep.subr.bf16.mxu0 %v4049_v22  ;;  %374 = vmatprep.subr.bf16.mxu1 %v4051_v24  ;;  %v4690_v41 = vld [vmem:[#allocation9 + $0x134] ss:$8 sps:$4 sm:$0xff]   ;;  %v4688_v42 = vld [vmem:[#allocation9 + $0x130] ss:$8 sps:$4 sm:$0xff]   ;;  %v4699_v47 = vld [vmem:[#allocation9 + $0x164] ss:$8 sps:$4 sm:$0xff]  }
  0x65   :  { %v4696_v45 = vld [vmem:[#allocation9 + $0x154] ss:$8 sps:$4 sm:$0xff]   ;;  %v4694_v46 = vld [vmem:[#allocation9 + $0x150] ss:$8 sps:$4 sm:$0xff]   ;;  %v4697_v48 = vld [vmem:[#allocation9 + $0x160] ss:$8 sps:$4 sm:$0xff]  }
  0x66   :  { %4060 = vmatmul.mubr.msk.bf16.vlgmr.msra.gmra.mrb[0].mxu0 %vm247_vm0, %v108_v27  ;;  %4061 = vmatmul.mubr.msk.bf16.vlgmr.msra.gmra.mrb[0].mxu1 %vm247_vm0, %v108_v27  ;;  %v4702_v49 = vld [vmem:[#allocation9 + $0x174] ss:$8 sps:$4 sm:$0xff]   ;;  %v4700_v50 = vld [vmem:[#allocation9 + $0x170] ss:$8 sps:$4 sm:$0xff]   ;;  %v4705_v51 = vld [vmem:[#allocation9 + $0x184] ss:$8 sps:$4 sm:$0xff]  }
  0x67   :  { %334 = vmatpush1.bf16.msra.mxu0 %v4048_v29  ;;  %375 = vmatpush1.bf16.msra.mxu1 %v4050_v30  ;;  %v4703_v52 = vld [vmem:[#allocation9 + $0x180] ss:$8 sps:$4 sm:$0xff]   ;;  %v4708_v53 = vld [vmem:[#allocation9 + $0x194] ss:$8 sps:$4 sm:$0xff]   ;;  %v4706_v54 = vld [vmem:[#allocation9 + $0x190] ss:$8 sps:$4 sm:$0xff]  }
  0x68   :  { %335 = vmatprep.subr.bf16.mxu0 %v4057_v31  ;;  %376 = vmatprep.subr.bf16.mxu1 %v4059_v32  ;;  %v4711_v55 = vld [vmem:[#allocation9 + $0x1a4] ss:$8 sps:$4 sm:$0xff]   ;;  %v4709_v56 = vld [vmem:[#allocation9 + $0x1a0] ss:$8 sps:$4 sm:$0xff]   ;;  %v4714_v57 = vld [vmem:[#allocation9 + $0x1b4] ss:$8 sps:$4 sm:$0xff]  }
  0x69   :  { %365 = vmatprep.mubr.bf16.mxu0 %v5391_v0  ;;  %406 = vmatprep.mubr.bf16.mxu1 %v5391_v0  ;;  %v4712_v58 = vld [vmem:[#allocation9 + $0x1b0] ss:$8 sps:$4 sm:$0xff]   ;;  %v4717_v59 = vld [vmem:[#allocation9 + $0x1c4] ss:$8 sps:$4 sm:$0xff]   ;;  %v4715_v60 = vld [vmem:[#allocation9 + $0x1c0] ss:$8 sps:$4 sm:$0xff]  }
  0x6a   :  { %v4720_v61 = vld [vmem:[#allocation9 + $0x1d4] ss:$8 sps:$4 sm:$0xff]   ;;  %v4718_v62 = vld [vmem:[#allocation9 + $0x1d0] ss:$8 sps:$4 sm:$0xff]   ;;  %v4723_v63 = vld [vmem:[#allocation9 + $0x1e4] ss:$8 sps:$4 sm:$0xff]  }
  0x6b   :  { %336 = vmatpush1.bf16.msra.mxu0 %v4056_v33  ;;  %377 = vmatpush1.bf16.msra.mxu1 %v4058_v34  ;;  %v4721_v0 = vld [vmem:[#allocation9 + $0x1e0] ss:$8 sps:$4 sm:$0xff]   ;;  %v4726_v1 = vld [vmem:[#allocation9 + $0x1f4] ss:$8 sps:$4 sm:$0xff]   ;;  %v4724_v2 = vld [vmem:[#allocation9 + $0x1f0] ss:$8 sps:$4 sm:$0xff]  }
  0x6c   :  { %703 = vmatprep.subr.bf16.mxu0 %v4681_v35  ;;  %v4731_v3 = vld [vmem:[#allocation9 + $0x4] ss:$8 sps:$4 sm:$0xff]   ;;  %v125_v7 = vld [vmem:[%s5708_s2] sm:$0xff]  ;;  %v137_v8 = vsub.s32 2, %v128_v5  ;;  %v5529_v9 = vsub.s32 1, %v128_v5  ;;  %v141_v10 = vsub.s32 3, %v128_v5  ;;  %vm5655_vm6 = vmor %vm3152_vm4, %vm3153_vm5 }
  0x6d   :  { %v130_v11 = vrot.slane %v125_v7, %v5524_v6  ;;  %v145_v19 = vsub.s32 4, %v128_v5  ;;  %v153_v24 = vsub.s32 6, %v128_v5  ;;  %v149_v25 = vsub.s32 5, %v128_v5 }
  0x6e   :  { %4062 = vmatmul.mubr.msk.bf16.vlgmr.msra.gmra.mrb[4].mxu0 %vm247_vm0, %v108_v27  ;;  %4063 = vmatmul.mubr.msk.bf16.vlgmr.msra.gmra.mrb[4].mxu1 %vm247_vm0, %v108_v27  ;;  %v138_v12 = vrot.slane %v125_v7, %v137_v8  ;;  %v134_v13 = vrot.slane %v125_v7, %v5529_v9  ;;  %v142_v14 = vrot.slane %v125_v7, %v141_v10  ;;  %v157_v30 = vsub.s32 7, %v128_v5  ;;  %v4729_v5 = vld [vmem:[#allocation9] ss:$8 sps:$4 sm:$0xff]  }
  0x6f   :  { %704 = vmatpush1.bf16.msra.mxu0 %v4679_v36  ;;  %v146_v35 = vrot.slane %v125_v7, %v145_v19  ;;  %v5539_v8 = vld [vmem:[#allocation2] sm:$0xff]  ;;  %v4744_v19 = vld [vmem:[#allocation9 + $0x50] ss:$8 sps:$4 sm:$0xff]  }
  0x70   :  { %705 = vmatprep.subr.bf16.mxu0 %v4684_v37  ;;  %v154_v37 = vrot.slane %v125_v7, %v153_v24  ;;  %v4755_v24 = vld [vmem:[#allocation9 + $0x84] ss:$8 sps:$4 sm:$0xff]  }
  0x73   :  { %706 = vmatpush1.bf16.msra.mxu0 %v4682_v38  ;;  %v150_v38 = vrot.slane %v125_v7, %v149_v25  ;;  %v4753_v25 = vld [vmem:[#allocation9 + $0x80] ss:$8 sps:$4 sm:$0xff]  }
  0x74   :  { %707 = vmatprep.subr.bf16.mxu0 %v4687_v39 }
  0x77   :  { %708 = vmatpush1.bf16.msra.mxu0 %v4685_v40  ;;  %v158_v40 = vrot.slane %v125_v7, %v157_v30  ;;  %v4734_v7 = vld [vmem:[#allocation9 + $0x14] ss:$8 sps:$4 sm:$0xff]  }
  0x78   :  { %709 = vmatprep.subr.bf16.mxu0 %v4690_v41  ;;  %v4764_v30 = vld [vmem:[#allocation9 + $0xb4] ss:$8 sps:$4 sm:$0xff]  }
  0x7b   :  { %710 = vmatpush1.bf16.msra.mxu0 %v4688_v42 }
  0x7c   :  { %711 = vmatprep.subr.bf16.mxu0 %v4693_v43 }
  0x7f   :  { %712 = vmatpush1.bf16.msra.mxu0 %v4691_v44 }
  0x80   :  { %713 = vmatprep.subr.bf16.mxu0 %v4696_v45 }
  0x83   :  { %714 = vmatpush1.bf16.msra.mxu0 %v4694_v46 }
  0x84   :  { %715 = vmatprep.subr.bf16.mxu0 %v4699_v47 }
  0x87   :  { %716 = vmatpush1.bf16.msra.mxu0 %v4697_v48 }
  0x88   :  { %717 = vmatprep.subr.bf16.mxu0 %v4702_v49 }
  0x8b   :  { %718 = vmatpush1.bf16.msra.mxu0 %v4700_v50 }
  0x8c   :  { %719 = vmatprep.subr.bf16.mxu0 %v4705_v51 }
  0x8f   :  { %720 = vmatpush1.bf16.msra.mxu0 %v4703_v52 }
  0x90   :  { %721 = vmatprep.subr.bf16.mxu0 %v4708_v53 }
  0x93   :  { %722 = vmatpush1.bf16.msra.mxu0 %v4706_v54 }
  0x94   :  { %723 = vmatprep.subr.bf16.mxu0 %v4711_v55 }
  0x97   :  { %724 = vmatpush1.bf16.msra.mxu0 %v4709_v56 }
  0x98   :  { %725 = vmatprep.subr.bf16.mxu0 %v4714_v57 }
  0x9b   :  { %726 = vmatpush1.bf16.msra.mxu0 %v4712_v58 }
  0x9c   :  { %727 = vmatprep.subr.bf16.mxu0 %v4717_v59 }
  0x9f   :  { %728 = vmatpush1.bf16.msra.mxu0 %v4715_v60 }
  0xa0   :  { %729 = vmatprep.subr.bf16.mxu0 %v4720_v61 }
  0xa3   :  { %730 = vmatpush1.bf16.msra.mxu0 %v4718_v62  ;;  %v496_v62 = vld [vmem:[#allocation2] sm:$0xee] }
  0xa4   :  { %731 = vmatprep.subr.bf16.mxu0 %v4723_v63 }
  0xa7   :  { %732 = vmatpush1.bf16.msra.mxu0 %v4721_v0 }
  0xa8   :  { %733 = vmatprep.subr.bf16.mxu0 %v4726_v1 }
  0xab   :  { %734 = vmatpush1.bf16.msra.mxu0 %v4724_v2 }
  0xac   :  { %916 = vmatprep.subr.bf16.mxu0 %v4731_v3 }
 0x139   :  { %v285_v15 = vpop.f32.mrb[0].mxu0  ;;  %v326_v17 = vpop.f32.mrb[0].mxu1 }
 0x13a   :  { %v286_v16 = vadd.f32 %v285_v15, %v130_v11  ;;  %v287_v18 = vpop.f32.mrb[1].mxu0  ;;  %v327_v20 = vadd.f32 %v326_v17, %v138_v12  ;;  %v328_v22 = vpop.f32.mrb[1].mxu1  ;;  %v4732_v11 = vld [vmem:[#allocation9 + $0x10] ss:$8 sps:$4 sm:$0xff]   ;;  %v4737_v12 = vld [vmem:[#allocation9 + $0x24] ss:$8 sps:$4 sm:$0xff]  }
 0x13b   :  { %v288_v21 = vadd.f32 %v287_v18, %v134_v13  ;;  %v289_v23 = vpop.f32.mrb[2].mxu0  ;;  %v329_v27 = vadd.f32 %v328_v22, %v142_v14  ;;  %v330_v28 = vpop.f32.mrb[2].mxu1  ;;  %v4735_v13 = vld [vmem:[#allocation9 + $0x20] ss:$8 sps:$4 sm:$0xff]   ;;  %v4740_v14 = vld [vmem:[#allocation9 + $0x34] ss:$8 sps:$4 sm:$0xff]  }
 0x13c   :  { %v415_v26 = vmax.f32 %v286_v16, 0.0  ;;  %v290_v29 = vpop.f32.mrb[3].mxu0  ;;  %v417_v31 = vmax.f32 %v327_v20, 0.0  ;;  %v331_v33 = vpop.f32.mrb[3].mxu1  ;;  %v4738_v15 = vld [vmem:[#allocation9 + $0x30] ss:$8 sps:$4 sm:$0xff]  }
 0x13d   :  { %v416_v32 = vmax.f32 %v288_v21, 0.0  ;;  %v418_v34 = vmax.f32 %v329_v27, 0.0  ;;  %v4743_v16 = vld [vmem:[#allocation9 + $0x44] ss:$8 sps:$4 sm:$0xff]   ;;  %v4741_v17 = vld [vmem:[#allocation9 + $0x40] ss:$8 sps:$4 sm:$0xff]  }
 0x13e   :  { %v4746_v18 = vld [vmem:[#allocation9 + $0x54] ss:$8 sps:$4 sm:$0xff]   ;;  %v4749_v20 = vld [vmem:[#allocation9 + $0x64] ss:$8 sps:$4 sm:$0xff]   ;;  %v4747_v21 = vld [vmem:[#allocation9 + $0x60] ss:$8 sps:$4 sm:$0xff]  }
 0x13f   :  { %v4514_v36 = vpack.c.bf16 %v416_v32, %v415_v26  ;;  %v4515_v39 = vpack.c.bf16 %v418_v34, %v417_v31  ;;  %v4752_v22 = vld [vmem:[#allocation9 + $0x74] ss:$8 sps:$4 sm:$0xff]   ;;  %v4750_v23 = vld [vmem:[#allocation9 + $0x70] ss:$8 sps:$4 sm:$0xff]   ;;  %v4761_v28 = vld [vmem:[#allocation9 + $0xa4] ss:$8 sps:$4 sm:$0xff]  }
 0x140   :  { %v4758_v26 = vld [vmem:[#allocation9 + $0x94] ss:$8 sps:$4 sm:$0xff]   ;;  %v4756_v27 = vld [vmem:[#allocation9 + $0x90] ss:$8 sps:$4 sm:$0xff]   ;;  %v4759_v29 = vld [vmem:[#allocation9 + $0xa0] ss:$8 sps:$4 sm:$0xff]  }
 0x141   :  { %437 = vst [vmem:[#allocation2 + $0x8] sm:$0x11] %v4514_v36  ;;  %v367_v41 = vpop.f32.mrb[4].mxu0  ;;  %v443_v42 = vrot.slane %v4515_v39, 7  ;;  %v408_v44 = vpop.f32.mrb[4].mxu1 }
 0x142   :  { %v368_v43 = vadd.f32 %v367_v41, %v146_v35  ;;  %v369_v45 = vpop.f32.mrb[5].mxu0  ;;  %v409_v46 = vadd.f32 %v408_v44, %v154_v37  ;;  %v410_v48 = vpop.f32.mrb[5].mxu1  ;;  %v4762_v31 = vld [vmem:[#allocation9 + $0xb0] ss:$8 sps:$4 sm:$0xff]   ;;  %v4767_v32 = vld [vmem:[#allocation9 + $0xc4] ss:$8 sps:$4 sm:$0xff]  }
 0x143   :  { %v370_v47 = vadd.f32 %v369_v45, %v150_v38  ;;  %v371_v49 = vpop.f32.mrb[6].mxu0  ;;  %445 = vst [vmem:[#allocation2 + $0x8] sm:$0x22] %v443_v42  ;;  %v411_v51 = vadd.f32 %v410_v48, %v158_v40  ;;  %v412_v52 = vpop.f32.mrb[6].mxu1  ;;  %v4765_v33 = vld [vmem:[#allocation9 + $0xc0] ss:$8 sps:$4 sm:$0xff]  }
 0x144   :  { %v419_v50 = vmax.f32 %v368_v43, 0.0  ;;  %v372_v53 = vpop.f32.mrb[7].mxu0  ;;  %v421_v54 = vmax.f32 %v409_v46, 0.0  ;;  %v413_v56 = vpop.f32.mrb[7].mxu1  ;;  %v4770_v34 = vld [vmem:[#allocation9 + $0xd4] ss:$8 sps:$4 sm:$0xff]  }
 0x145   :  { %v420_v55 = vmax.f32 %v370_v47, 0.0  ;;  %v422_v57 = vmax.f32 %v411_v51, 0.0  ;;  %v4768_v35 = vld [vmem:[#allocation9 + $0xd0] ss:$8 sps:$4 sm:$0xff]   ;;  %v4773_v36 = vld [vmem:[#allocation9 + $0xe4] ss:$8 sps:$4 sm:$0xff]  }
 0x146   :  { %v4771_v37 = vld [vmem:[#allocation9 + $0xe0] ss:$8 sps:$4 sm:$0xff]   ;;  %v5545_v39 = vld [vmem:[#allocation2 + $0x10] sm:$0x11]  ;;  %v4776_v40 = vld [vmem:[#allocation9 + $0xf4] ss:$8 sps:$4 sm:$0xff]  }
 0x147   :  { %v4516_v58 = vpack.c.bf16 %v420_v55, %v419_v50  ;;  %v4517_v59 = vpack.c.bf16 %v422_v57, %v421_v54  ;;  %v5543_v38 = vld [vmem:[#allocation2] sm:$0xcc]  ;;  %v4139_v42 = vcombine.high %v5545_v39, %v5545_v39  ;;  %v4774_v43 = vld [vmem:[#allocation9 + $0xf0] ss:$8 sps:$4 sm:$0xff]   ;;  %v4784_v49 = vld [vmem:[#allocation9 + $0x214] ss:$8 sps:$4 sm:$0xff]  }
 0x148   :  { %v4779_v44 = vld [vmem:[#allocation9 + $0x204] ss:$8 sps:$4 sm:$0xff]   ;;  %v4777_v47 = vld [vmem:[#allocation9 + $0x200] ss:$8 sps:$4 sm:$0xff]   ;;  %v4782_v51 = vld [vmem:[#allocation9 + $0x210] ss:$8 sps:$4 sm:$0xff]  }
 0x149   :  { %v451_v60 = vrot.slane %v4516_v58, 6  ;;  %v459_v61 = vrot.slane %v4517_v59, 5  ;;  %v1013_v46 = vrot.slane %v4139_v42, 2  ;;  %v4787_v52 = vld [vmem:[#allocation9 + $0x224] ss:$8 sps:$4 sm:$0xff]  }
 0x14a   :  { %v4785_v53 = vld [vmem:[#allocation9 + $0x220] ss:$8 sps:$4 sm:$0xff]   ;;  %v4790_v54 = vld [vmem:[#allocation9 + $0x234] ss:$8 sps:$4 sm:$0xff]   ;;  %v4788_v55 = vld [vmem:[#allocation9 + $0x230] ss:$8 sps:$4 sm:$0xff]  }
 0x14b   :  { %453 = vst [vmem:[#allocation2 + $0x8] sm:$0x44] %v451_v60  ;;  %461 = vst [vmem:[#allocation2 + $0x8] sm:$0x88] %v459_v61  ;;  %v4793_v56 = vld [vmem:[#allocation9 + $0x244] ss:$8 sps:$4 sm:$0xff]  }
 0x14c   :  { %v4791_v57 = vld [vmem:[#allocation9 + $0x240] ss:$8 sps:$4 sm:$0xff]   ;;  %v4796_v58 = vld [vmem:[#allocation9 + $0x254] ss:$8 sps:$4 sm:$0xff]   ;;  %v4794_v59 = vld [vmem:[#allocation9 + $0x250] ss:$8 sps:$4 sm:$0xff]  }
 0x14d   :  { %v4799_v60 = vld [vmem:[#allocation9 + $0x264] ss:$8 sps:$4 sm:$0xff]   ;;  %v4797_v61 = vld [vmem:[#allocation9 + $0x260] ss:$8 sps:$4 sm:$0xff]  }
 0x14e   :  { %v4837_v42 = vld [vmem:[#allocation9 + $0x320] ss:$8 sps:$4 sm:$0xff]  }
 0x152   :  { %v5533_v63 = vld [vmem:[#allocation2 + $0x8] sm:$0xff] }
 0x153   :  { %v4068_v0 = vcombine.low %v496_v62, %v5533_v63  ;;  %v4069_v1 = vcombine.high %v496_v62, %v5533_v63  ;;  %v5537_v2 = vld [vmem:[#allocation2 + $0x8] sm:$0x77]  ;;  %v4137_v41 = vcombine.high %v5543_v38, %v5533_v63  ;;  %v4802_v62 = vld [vmem:[#allocation9 + $0x274] ss:$8 sps:$4 sm:$0xff]  }
 0x154   :  { %v4103_v10 = vcombine.high %v5539_v8, %v5537_v2  ;;  %v4102_v48 = vcombine.low %v5539_v8, %v5537_v2  ;;  %v4803_v2 = vld [vmem:[#allocation9 + $0x280] ss:$8 sps:$4 sm:$0xff]  }
 0x155   :  { %v539_v3 = vrot.slane %v4068_v0, 1  ;;  %v540_v4 = vrot.slane %v4069_v1, 1  ;;  %v1012_v45 = vrot.slane %v4137_v41, 2  ;;  %v4800_v0 = vld [vmem:[#allocation9 + $0x270] ss:$8 sps:$4 sm:$0xff]  }
 0x156   :  { %v4805_v1 = vld [vmem:[#allocation9 + $0x284] ss:$8 sps:$4 sm:$0xff]  }
 0x157   :  { %735 = vmatprep.mubr.bf16.mxu0 %v540_v4  ;;  %v1014_v50 = vsel %vm1008_vm1, %v1012_v45, %v1013_v46  ;;  %v4806_v4 = vld [vmem:[#allocation9 + $0x290] ss:$8 sps:$4 sm:$0xff]   ;;  %v4939_v41 = vld [vmem:[#allocation10 + $0x124] ss:$8 sps:$4 sm:$0xff]   ;;  %v4942_v45 = vld [vmem:[#allocation10 + $0x134] ss:$8 sps:$4 sm:$0xff]  }
 0x158   :  { %736 = vmatmul.mubr.bf16.vlgmr.msra.gmra.mrb[8].mxu0 %v539_v3  ;;  %v4808_v3 = vld [vmem:[#allocation9 + $0x294] ss:$8 sps:$4 sm:$0xff]   ;;  %v4840_v46 = vld [vmem:[#allocation9 + $0x330] ss:$8 sps:$4 sm:$0xff]  }
 0x159   :  { %917 = vmatpush1.bf16.msra.mxu0 %v4729_v5  ;;  %948 = vmatprep.mubr.bf16.mxu0 %v4103_v10  ;;  %v4811_v5 = vld [vmem:[#allocation9 + $0x2a4] ss:$8 sps:$4 sm:$0xff]   ;;  %v4814_v10 = vld [vmem:[#allocation9 + $0x2b4] ss:$8 sps:$4 sm:$0xff]  }
 0x15a   :  { %918 = vmatprep.subr.bf16.mxu0 %v4734_v7  ;;  %v4809_v7 = vld [vmem:[#allocation9 + $0x2a0] ss:$8 sps:$4 sm:$0xff]  }
 0x15d   :  { %919 = vmatpush1.bf16.msra.mxu0 %v4732_v11  ;;  %v4812_v11 = vld [vmem:[#allocation9 + $0x2b0] ss:$8 sps:$4 sm:$0xff]  }
 0x15e   :  { %920 = vmatprep.subr.bf16.mxu0 %v4737_v12  ;;  %v4817_v12 = vld [vmem:[#allocation9 + $0x2c4] ss:$8 sps:$4 sm:$0xff]  }
 0x161   :  { %921 = vmatpush1.bf16.msra.mxu0 %v4735_v13  ;;  %v4815_v13 = vld [vmem:[#allocation9 + $0x2c0] ss:$8 sps:$4 sm:$0xff]  }
 0x162   :  { %922 = vmatprep.subr.bf16.mxu0 %v4740_v14  ;;  %v4820_v14 = vld [vmem:[#allocation9 + $0x2d4] ss:$8 sps:$4 sm:$0xff]  }
 0x165   :  { %923 = vmatpush1.bf16.msra.mxu0 %v4738_v15  ;;  %v4818_v15 = vld [vmem:[#allocation9 + $0x2d0] ss:$8 sps:$4 sm:$0xff]  }
 0x166   :  { %924 = vmatprep.subr.bf16.mxu0 %v4743_v16  ;;  %v4823_v16 = vld [vmem:[#allocation9 + $0x2e4] ss:$8 sps:$4 sm:$0xff]  }
 0x169   :  { %925 = vmatpush1.bf16.msra.mxu0 %v4741_v17  ;;  %v4821_v17 = vld [vmem:[#allocation9 + $0x2e0] ss:$8 sps:$4 sm:$0xff]  }
 0x16a   :  { %926 = vmatprep.subr.bf16.mxu0 %v4746_v18  ;;  %v5554_v18 = vld [vmem:[#allocation2] sm:$0x88] }
 0x16d   :  { %927 = vmatpush1.bf16.msra.mxu0 %v4744_v19  ;;  %v5556_v19 = vld [vmem:[#allocation2 + $0x10] sm:$0x33] }
 0x16e   :  { %928 = vmatprep.subr.bf16.mxu0 %v4749_v20  ;;  %v4826_v20 = vld [vmem:[#allocation9 + $0x2f4] ss:$8 sps:$4 sm:$0xff]  }
 0x171   :  { %929 = vmatpush1.bf16.msra.mxu0 %v4747_v21  ;;  %v4136_v21 = vcombine.low %v5543_v38, %v5533_v63  ;;  %v4936_v38 = vld [vmem:[#allocation10 + $0x114] ss:$8 sps:$4 sm:$0xff]  }
 0x172   :  { %930 = vmatprep.subr.bf16.mxu0 %v4752_v22  ;;  %v4138_v22 = vcombine.low %v5545_v39, %v5545_v39  ;;  %v4839_v39 = vld [vmem:[#allocation9 + $0x324] ss:$8 sps:$4 sm:$0xff]  }
 0x175   :  { %931 = vmatpush1.bf16.msra.mxu0 %v4750_v23  ;;  %v4173_v23 = vcombine.high %v5554_v18, %v5533_v63 }
 0x176   :  { %932 = vmatprep.subr.bf16.mxu0 %v4755_v24  ;;  %v4175_v24 = vcombine.high %v5556_v19, %v5556_v19 }
 0x179   :  { %933 = vmatpush1.bf16.msra.mxu0 %v4753_v25  ;;  %v4824_v25 = vld [vmem:[#allocation9 + $0x2f0] ss:$8 sps:$4 sm:$0xff]  }
 0x17a   :  { %934 = vmatprep.subr.bf16.mxu0 %v4758_v26  ;;  %v4831_v26 = vld [vmem:[#allocation9 + $0x304] ss:$8 sps:$4 sm:$0xff]  }
 0x17d   :  { %935 = vmatpush1.bf16.msra.mxu0 %v4756_v27  ;;  %v1009_v27 = vrot.slane %v4136_v21, 2  ;;  %v4867_v21 = vld [vmem:[#allocation9 + $0x3c0] ss:$8 sps:$4 sm:$0xff]  }
 0x17e   :  { %936 = vmatprep.subr.bf16.mxu0 %v4761_v28  ;;  %v1010_v28 = vrot.slane %v4138_v22, 2  ;;  %v4872_v22 = vld [vmem:[#allocation9 + $0x3d4] ss:$8 sps:$4 sm:$0xff]  }
 0x181   :  { %937 = vmatpush1.bf16.msra.mxu0 %v4759_v29  ;;  %v1273_v29 = vrot.slane %v4173_v23, 3  ;;  %v4870_v23 = vld [vmem:[#allocation9 + $0x3d0] ss:$8 sps:$4 sm:$0xff]  }
 0x182   :  { %938 = vmatprep.subr.bf16.mxu0 %v4764_v30  ;;  %v1274_v30 = vrot.slane %v4175_v24, 3  ;;  %v4875_v24 = vld [vmem:[#allocation9 + $0x3e4] ss:$8 sps:$4 sm:$0xff]  }
 0x185   :  { %939 = vmatpush1.bf16.msra.mxu0 %v4762_v31  ;;  %v4829_v31 = vld [vmem:[#allocation9 + $0x300] ss:$8 sps:$4 sm:$0xff]  }
 0x186   :  { %940 = vmatprep.subr.bf16.mxu0 %v4767_v32  ;;  %v4836_v32 = vld [vmem:[#allocation9 + $0x314] ss:$8 sps:$4 sm:$0xff]  }
 0x189   :  { %941 = vmatpush1.bf16.msra.mxu0 %v4765_v33  ;;  %v1011_v33 = vsel %vm1008_vm1, %v1009_v27, %v1010_v28  ;;  %v4172_v27 = vcombine.low %v5554_v18, %v5533_v63  ;;  %v4174_v28 = vcombine.low %v5556_v19, %v5556_v19  ;;  %v4886_v19 = vld [vmem:[#allocation9 + $0x410] ss:$8 sps:$4 sm:$0xff]  }
 0x18a   :  { %942 = vmatprep.subr.bf16.mxu0 %v4770_v34  ;;  %v1275_v34 = vsel %vm1269_vm2, %v1273_v29, %v1274_v30  ;;  %v4876_v29 = vld [vmem:[#allocation9 + $0x3f0] ss:$8 sps:$4 sm:$0xff]   ;;  %v4883_v30 = vld [vmem:[#allocation9 + $0x404] ss:$8 sps:$4 sm:$0xff]  }
 0x18d   :  { %943 = vmatpush1.bf16.msra.mxu0 %v4768_v35  ;;  %v4931_v35 = vld [vmem:[#allocation10 + $0x100] ss:$8 sps:$4 sm:$0xff]  }
 0x18e   :  { %944 = vmatprep.subr.bf16.mxu0 %v4773_v36  ;;  %v4933_v36 = vld [vmem:[#allocation10 + $0x104] ss:$8 sps:$4 sm:$0xff]  }
 0x18f   :  { %2021 = vmatprep.subr.bf16.mxu1 %v4933_v36 }
 0x190   :  { %2022 = vmatpush1.bf16.msra.mxu1 %v4931_v35  ;;  %v4888_v35 = vld [vmem:[#allocation9 + $0x414] ss:$8 sps:$4 sm:$0xff]  }
 0x191   :  { %945 = vmatpush1.bf16.msra.mxu0 %v4771_v37  ;;  %v4834_v37 = vld [vmem:[#allocation9 + $0x310] ss:$8 sps:$4 sm:$0xff]   ;;  %2023 = vmatprep.subr.bf16.mxu1 %v4936_v38  ;;  %v4889_v38 = vld [vmem:[#allocation9 + $0x420] ss:$8 sps:$4 sm:$0xff]  }
 0x192   :  { %946 = vmatprep.subr.bf16.mxu0 %v4776_v40  ;;  %v4934_v40 = vld [vmem:[#allocation10 + $0x110] ss:$8 sps:$4 sm:$0xff]  }
 0x194   :  { %2024 = vmatpush1.bf16.msra.mxu1 %v4934_v40  ;;  %v4892_v40 = vld [vmem:[#allocation9 + $0x430] ss:$8 sps:$4 sm:$0xff]  }
 0x195   :  { %947 = vmatpush1.bf16.msra.mxu0 %v4774_v43  ;;  %v4842_v43 = vld [vmem:[#allocation9 + $0x334] ss:$8 sps:$4 sm:$0xff]   ;;  %2025 = vmatprep.subr.bf16.mxu1 %v4939_v41  ;;  %v4897_v41 = vld [vmem:[#allocation9 + $0x444] ss:$8 sps:$4 sm:$0xff]  }
 0x196   :  { %1177 = vmatprep.subr.bf16.mxu0 %v4779_v44  ;;  %v4937_v44 = vld [vmem:[#allocation10 + $0x120] ss:$8 sps:$4 sm:$0xff]  }
 0x198   :  { %949 = vmatmul.mubr.bf16.vlgmr.msra.gmra.mrb[8].mxu0 %v4102_v48  ;;  %2026 = vmatpush1.bf16.msra.mxu1 %v4937_v44  ;;  %v4940_v48 = vld [vmem:[#allocation10 + $0x130] ss:$8 sps:$4 sm:$0xff]  }
 0x199   :  { %1178 = vmatpush1.bf16.msra.mxu0 %v4777_v47  ;;  %1209 = vmatprep.mubr.bf16.mxu0 %v1014_v50  ;;  %v4845_v47 = vld [vmem:[#allocation9 + $0x344] ss:$8 sps:$4 sm:$0xff]   ;;  %v4843_v50 = vld [vmem:[#allocation9 + $0x340] ss:$8 sps:$4 sm:$0xff]   ;;  %v4898_v44 = vld [vmem:[#allocation9 + $0x450] ss:$8 sps:$4 sm:$0xff]  }
 0x19a   :  { %1179 = vmatprep.subr.bf16.mxu0 %v4784_v49  ;;  %2027 = vmatprep.subr.bf16.mxu1 %v4942_v45  ;;  %v4945_v49 = vld [vmem:[#allocation10 + $0x144] ss:$8 sps:$4 sm:$0xff]  }
 0x19b   :  { %v4903_v45 = vld [vmem:[#allocation9 + $0x464] ss:$8 sps:$4 sm:$0xff]  }
 0x19c   :  { %2028 = vmatpush1.bf16.msra.mxu1 %v4940_v48  ;;  %v4904_v48 = vld [vmem:[#allocation9 + $0x470] ss:$8 sps:$4 sm:$0xff]  }
 0x19d   :  { %1180 = vmatpush1.bf16.msra.mxu0 %v4782_v51  ;;  %v4848_v51 = vld [vmem:[#allocation9 + $0x354] ss:$8 sps:$4 sm:$0xff]   ;;  %2029 = vmatprep.subr.bf16.mxu1 %v4945_v49  ;;  %v4909_v49 = vld [vmem:[#allocation9 + $0x484] ss:$8 sps:$4 sm:$0xff]  }
 0x19e   :  { %1181 = vmatprep.subr.bf16.mxu0 %v4787_v52  ;;  %v4943_v52 = vld [vmem:[#allocation10 + $0x140] ss:$8 sps:$4 sm:$0xff]  }
 0x1a0   :  { %2030 = vmatpush1.bf16.msra.mxu1 %v4943_v52  ;;  %v4910_v52 = vld [vmem:[#allocation9 + $0x490] ss:$8 sps:$4 sm:$0xff]  }
 0x1a1   :  { %1182 = vmatpush1.bf16.msra.mxu0 %v4785_v53  ;;  %v4948_v53 = vld [vmem:[#allocation10 + $0x154] ss:$8 sps:$4 sm:$0xff]  }
 0x1a2   :  { %1183 = vmatprep.subr.bf16.mxu0 %v4790_v54  ;;  %v4846_v54 = vld [vmem:[#allocation9 + $0x350] ss:$8 sps:$4 sm:$0xff]   ;;  %2031 = vmatprep.subr.bf16.mxu1 %v4948_v53  ;;  %v4915_v53 = vld [vmem:[#allocation9 + $0x4a4] ss:$8 sps:$4 sm:$0xff]  }
 0x1a5   :  { %1184 = vmatpush1.bf16.msra.mxu0 %v4788_v55  ;;  %v4851_v55 = vld [vmem:[#allocation9 + $0x364] ss:$8 sps:$4 sm:$0xff]  }
 0x1a6   :  { %1185 = vmatprep.subr.bf16.mxu0 %v4793_v56  ;;  %v4946_v56 = vld [vmem:[#allocation10 + $0x150] ss:$8 sps:$4 sm:$0xff]  }
 0x1a7   :  { %2032 = vmatpush1.bf16.msra.mxu1 %v4946_v56  ;;  %v4916_v56 = vld [vmem:[#allocation9 + $0x4b0] ss:$8 sps:$4 sm:$0xff]  }
 0x1a9   :  { %1186 = vmatpush1.bf16.msra.mxu0 %v4791_v57  ;;  %v4951_v57 = vld [vmem:[#allocation10 + $0x164] ss:$8 sps:$4 sm:$0xff]  }
 0x1aa   :  { %1187 = vmatprep.subr.bf16.mxu0 %v4796_v58  ;;  %v4849_v58 = vld [vmem:[#allocation9 + $0x360] ss:$8 sps:$4 sm:$0xff]   ;;  %2033 = vmatprep.subr.bf16.mxu1 %v4951_v57  ;;  %v4921_v57 = vld [vmem:[#allocation9 + $0x4c4] ss:$8 sps:$4 sm:$0xff]  }
 0x1ad   :  { %1188 = vmatpush1.bf16.msra.mxu0 %v4794_v59  ;;  %v4854_v59 = vld [vmem:[#allocation9 + $0x374] ss:$8 sps:$4 sm:$0xff]  }
 0x1ae   :  { %1189 = vmatprep.subr.bf16.mxu0 %v4799_v60  ;;  %v4949_v60 = vld [vmem:[#allocation10 + $0x160] ss:$8 sps:$4 sm:$0xff]  }
 0x1af   :  { %2034 = vmatpush1.bf16.msra.mxu1 %v4949_v60  ;;  %v4922_v60 = vld [vmem:[#allocation9 + $0x4d0] ss:$8 sps:$4 sm:$0xff]  }
 0x1b1   :  { %1190 = vmatpush1.bf16.msra.mxu0 %v4797_v61  ;;  %v4954_v61 = vld [vmem:[#allocation10 + $0x174] ss:$8 sps:$4 sm:$0xff]  }
 0x1b2   :  { %1191 = vmatprep.subr.bf16.mxu0 %v4802_v62  ;;  %v4852_v62 = vld [vmem:[#allocation9 + $0x370] ss:$8 sps:$4 sm:$0xff]   ;;  %2035 = vmatprep.subr.bf16.mxu1 %v4954_v61  ;;  %v4927_v61 = vld [vmem:[#allocation9 + $0x4e4] ss:$8 sps:$4 sm:$0xff]  }
 0x1b5   :  { %1192 = vmatpush1.bf16.msra.mxu0 %v4800_v0  ;;  %v4857_v0 = vld [vmem:[#allocation9 + $0x384] ss:$8 sps:$4 sm:$0xff]  }
 0x1b6   :  { %1193 = vmatprep.subr.bf16.mxu0 %v4805_v1  ;;  %v4952_v1 = vld [vmem:[#allocation10 + $0x170] ss:$8 sps:$4 sm:$0xff]  }
 0x1b7   :  { %2036 = vmatpush1.bf16.msra.mxu1 %v4952_v1  ;;  %v4928_v1 = vld [vmem:[#allocation9 + $0x4f0] ss:$8 sps:$4 sm:$0xff]  }
 0x1b9   :  { %1194 = vmatpush1.bf16.msra.mxu0 %v4803_v2  ;;  %v4957_v2 = vld [vmem:[#allocation10 + $0x184] ss:$8 sps:$4 sm:$0xff]  }
 0x1ba   :  { %1195 = vmatprep.subr.bf16.mxu0 %v4808_v3  ;;  %v4855_v3 = vld [vmem:[#allocation9 + $0x380] ss:$8 sps:$4 sm:$0xff]   ;;  %2037 = vmatprep.subr.bf16.mxu1 %v4957_v2 }
 0x1bd   :  { %1196 = vmatpush1.bf16.msra.mxu0 %v4806_v4  ;;  %v4860_v4 = vld [vmem:[#allocation9 + $0x394] ss:$8 sps:$4 sm:$0xff]  }
 0x1be   :  { %1197 = vmatprep.subr.bf16.mxu0 %v4811_v5  ;;  %v4955_v5 = vld [vmem:[#allocation10 + $0x180] ss:$8 sps:$4 sm:$0xff]  }
 0x1bf   :  { %2038 = vmatpush1.bf16.msra.mxu1 %v4955_v5  ;;  %v4969_v5 = vld [vmem:[#allocation10 + $0x1c4] ss:$8 sps:$4 sm:$0xff]  }
 0x1c1   :  { %1198 = vmatpush1.bf16.msra.mxu0 %v4809_v7  ;;  %v4960_v7 = vld [vmem:[#allocation10 + $0x194] ss:$8 sps:$4 sm:$0xff]  }
 0x1c2   :  { %1199 = vmatprep.subr.bf16.mxu0 %v4814_v10  ;;  %v4858_v10 = vld [vmem:[#allocation9 + $0x390] ss:$8 sps:$4 sm:$0xff]   ;;  %2039 = vmatprep.subr.bf16.mxu1 %v4960_v7  ;;  %v4967_v7 = vld [vmem:[#allocation10 + $0x1c0] ss:$8 sps:$4 sm:$0xff]  }
 0x1c5   :  { %1200 = vmatpush1.bf16.msra.mxu0 %v4812_v11  ;;  %v4863_v11 = vld [vmem:[#allocation9 + $0x3a4] ss:$8 sps:$4 sm:$0xff]  }
 0x1c6   :  { %1201 = vmatprep.subr.bf16.mxu0 %v4817_v12  ;;  %v4958_v12 = vld [vmem:[#allocation10 + $0x190] ss:$8 sps:$4 sm:$0xff]  }
 0x1c7   :  { %2040 = vmatpush1.bf16.msra.mxu1 %v4958_v12  ;;  %v4975_v12 = vld [vmem:[#allocation10 + $0x1e4] ss:$8 sps:$4 sm:$0xff]  }
 0x1c9   :  { %1202 = vmatpush1.bf16.msra.mxu0 %v4815_v13  ;;  %v4963_v13 = vld [vmem:[#allocation10 + $0x1a4] ss:$8 sps:$4 sm:$0xff]  }
 0x1ca   :  { %1203 = vmatprep.subr.bf16.mxu0 %v4820_v14  ;;  %v4861_v14 = vld [vmem:[#allocation9 + $0x3a0] ss:$8 sps:$4 sm:$0xff]   ;;  %2041 = vmatprep.subr.bf16.mxu1 %v4963_v13 }
 0x1cb   :  { %v4973_v13 = vld [vmem:[#allocation10 + $0x1e0] ss:$8 sps:$4 sm:$0xff]  }
 0x1cd   :  { %1204 = vmatpush1.bf16.msra.mxu0 %v4818_v15  ;;  %v4866_v15 = vld [vmem:[#allocation9 + $0x3b4] ss:$8 sps:$4 sm:$0xff]  }
 0x1ce   :  { %1205 = vmatprep.subr.bf16.mxu0 %v4823_v16  ;;  %v4961_v16 = vld [vmem:[#allocation10 + $0x1a0] ss:$8 sps:$4 sm:$0xff]  }
 0x1cf   :  { %2042 = vmatpush1.bf16.msra.mxu1 %v4961_v16  ;;  %v1733_v16 = vld [vmem:[%s5710_s4] sm:$0x3] }
 0x1d1   :  { %1206 = vmatpush1.bf16.msra.mxu0 %v4821_v17  ;;  %v4864_v17 = vld [vmem:[#allocation9 + $0x3b0] ss:$8 sps:$4 sm:$0xff]  }
 0x1d2   :  { %1207 = vmatprep.subr.bf16.mxu0 %v4826_v20  ;;  %v4869_v20 = vld [vmem:[#allocation9 + $0x3c4] ss:$8 sps:$4 sm:$0xff]  }
 0x1d5   :  { %1208 = vmatpush1.bf16.msra.mxu0 %v4824_v25  ;;  %v4873_v25 = vld [vmem:[#allocation9 + $0x3e0] ss:$8 sps:$4 sm:$0xff]  }
 0x1d6   :  { %1438 = vmatprep.subr.bf16.mxu0 %v4831_v26  ;;  %v4878_v26 = vld [vmem:[#allocation9 + $0x3f4] ss:$8 sps:$4 sm:$0xff]  }
 0x1d8   :  { %1210 = vmatmul.mubr.bf16.vlgmr.msra.gmra.mrb[8].mxu0 %v1011_v33  ;;  %v5572_v33 = vld [vmem:[#allocation2 + $0x10] sm:$0x77] }
 0x1d9   :  { %1439 = vmatpush1.bf16.msra.mxu0 %v4829_v31  ;;  %1470 = vmatprep.mubr.bf16.mxu0 %v1275_v34  ;;  %v1270_v31 = vrot.slane %v4172_v27, 3  ;;  %v4881_v34 = vld [vmem:[#allocation9 + $0x400] ss:$8 sps:$4 sm:$0xff]   ;;  %v4209_v18 = vcombine.high %v5533_v63, %v5572_v33  ;;  %v4208_v2 = vcombine.low %v5533_v63, %v5572_v33  ;;  %v4982_v63 = vld [vmem:[#allocation10 + $0x4] ss:$8 sps:$4 sm:$0xff]  }
 0x1da   :  { %1440 = vmatprep.subr.bf16.mxu0 %v4836_v32  ;;  %v1271_v32 = vrot.slane %v4174_v28, 3 }
 0x1dc   :  { %v1272_v36 = vsel %vm1269_vm2, %v1270_v31, %v1271_v32 }
 0x1dd   :  { %1441 = vmatpush1.bf16.msra.mxu0 %v4834_v37  ;;  %v4891_v37 = vld [vmem:[#allocation9 + $0x424] ss:$8 sps:$4 sm:$0xff]  }
 0x1de   :  { %1442 = vmatprep.subr.bf16.mxu0 %v4839_v39  ;;  %v4894_v39 = vld [vmem:[#allocation9 + $0x434] ss:$8 sps:$4 sm:$0xff]  }
 0x1e1   :  { %1443 = vmatpush1.bf16.msra.mxu0 %v4837_v42  ;;  %v4895_v42 = vld [vmem:[#allocation9 + $0x440] ss:$8 sps:$4 sm:$0xff]  }
 0x1e2   :  { %1444 = vmatprep.subr.bf16.mxu0 %v4842_v43  ;;  %v4900_v43 = vld [vmem:[#allocation9 + $0x454] ss:$8 sps:$4 sm:$0xff]  }
 0x1e5   :  { %1445 = vmatpush1.bf16.msra.mxu0 %v4840_v46  ;;  %v4901_v46 = vld [vmem:[#allocation9 + $0x460] ss:$8 sps:$4 sm:$0xff]  }
 0x1e6   :  { %1446 = vmatprep.subr.bf16.mxu0 %v4845_v47  ;;  %v4906_v47 = vld [vmem:[#allocation9 + $0x474] ss:$8 sps:$4 sm:$0xff]  }
 0x1e9   :  { %1447 = vmatpush1.bf16.msra.mxu0 %v4843_v50  ;;  %v4907_v50 = vld [vmem:[#allocation9 + $0x480] ss:$8 sps:$4 sm:$0xff]  }
 0x1ea   :  { %1448 = vmatprep.subr.bf16.mxu0 %v4848_v51  ;;  %v4912_v51 = vld [vmem:[#allocation9 + $0x494] ss:$8 sps:$4 sm:$0xff]  }
 0x1ed   :  { %1449 = vmatpush1.bf16.msra.mxu0 %v4846_v54  ;;  %v4913_v54 = vld [vmem:[#allocation9 + $0x4a0] ss:$8 sps:$4 sm:$0xff]  }
 0x1ee   :  { %1450 = vmatprep.subr.bf16.mxu0 %v4851_v55  ;;  %v4918_v55 = vld [vmem:[#allocation9 + $0x4b4] ss:$8 sps:$4 sm:$0xff]  }
 0x1f1   :  { %1451 = vmatpush1.bf16.msra.mxu0 %v4849_v58  ;;  %v4919_v58 = vld [vmem:[#allocation9 + $0x4c0] ss:$8 sps:$4 sm:$0xff]  }
 0x1f2   :  { %1452 = vmatprep.subr.bf16.mxu0 %v4854_v59  ;;  %v4924_v59 = vld [vmem:[#allocation9 + $0x4d4] ss:$8 sps:$4 sm:$0xff]  }
 0x1f5   :  { %1453 = vmatpush1.bf16.msra.mxu0 %v4852_v62  ;;  %v4925_v62 = vld [vmem:[#allocation9 + $0x4e0] ss:$8 sps:$4 sm:$0xff]  }
 0x1f6   :  { %1454 = vmatprep.subr.bf16.mxu0 %v4857_v0  ;;  %v4930_v0 = vld [vmem:[#allocation9 + $0x4f4] ss:$8 sps:$4 sm:$0xff]  }
 0x1f9   :  { %1455 = vmatpush1.bf16.msra.mxu0 %v4855_v3  ;;  %v4966_v3 = vld [vmem:[#allocation10 + $0x1b4] ss:$8 sps:$4 sm:$0xff]  }
 0x1fa   :  { %1456 = vmatprep.subr.bf16.mxu0 %v4860_v4  ;;  %v4964_v4 = vld [vmem:[#allocation10 + $0x1b0] ss:$8 sps:$4 sm:$0xff]   ;;  %2043 = vmatprep.subr.bf16.mxu1 %v4966_v3 }
 0x1fb   :  { %2044 = vmatpush1.bf16.msra.mxu1 %v4964_v4 }
 0x1fc   :  { %2045 = vmatprep.subr.bf16.mxu1 %v4969_v5  ;;  %v4986_v5 = vld [vmem:[#allocation10 + $0x14] ss:$8 sps:$4 sm:$0xff]  }
 0x1fd   :  { %1457 = vmatpush1.bf16.msra.mxu0 %v4858_v10  ;;  %v4972_v10 = vld [vmem:[#allocation10 + $0x1d4] ss:$8 sps:$4 sm:$0xff]  }
 0x1fe   :  { %1458 = vmatprep.subr.bf16.mxu0 %v4863_v11  ;;  %v4970_v11 = vld [vmem:[#allocation10 + $0x1d0] ss:$8 sps:$4 sm:$0xff]  }
 0x1ff   :  { %2046 = vmatpush1.bf16.msra.mxu1 %v4967_v7 }
 0x200   :  { %2047 = vmatprep.subr.bf16.mxu1 %v4972_v10 }
 0x201   :  { %1459 = vmatpush1.bf16.msra.mxu0 %v4861_v14  ;;  %v4978_v14 = vld [vmem:[#allocation10 + $0x1f4] ss:$8 sps:$4 sm:$0xff]  }
 0x202   :  { %1460 = vmatprep.subr.bf16.mxu0 %v4866_v15  ;;  %v4976_v15 = vld [vmem:[#allocation10 + $0x1f0] ss:$8 sps:$4 sm:$0xff]  }
 0x203   :  { %2048 = vmatpush1.bf16.msra.mxu1 %v4970_v11 }
 0x204   :  { %2049 = vmatprep.subr.bf16.mxu1 %v4975_v12 }
 0x205   :  { %1461 = vmatpush1.bf16.msra.mxu0 %v4864_v17  ;;  %v1738_v17 = vrot.slane %v1733_v16, %v5524_v6 }
 0x206   :  { %1462 = vmatprep.subr.bf16.mxu0 %v4869_v20  ;;  %v1742_v20 = vrot.slane %v1733_v16, %v5529_v9 }
 0x207   :  { %2050 = vmatpush1.bf16.msra.mxu1 %v4973_v13  ;;  %v4984_v13 = vld [vmem:[#allocation10 + $0x10] ss:$8 sps:$4 sm:$0xff]  }
 0x208   :  { %2051 = vmatprep.subr.bf16.mxu1 %v4978_v14  ;;  %v4989_v14 = vld [vmem:[#allocation10 + $0x24] ss:$8 sps:$4 sm:$0xff]  }
 0x209   :  { %1463 = vmatpush1.bf16.msra.mxu0 %v4867_v21 }
 0x20a   :  { %1464 = vmatprep.subr.bf16.mxu0 %v4872_v22 }
 0x20b   :  { %2052 = vmatpush1.bf16.msra.mxu1 %v4976_v15  ;;  %v4987_v15 = vld [vmem:[#allocation10 + $0x20] ss:$8 sps:$4 sm:$0xff]  }
 0x20c   :  { %2246 = vmatprep.subr.bf16.mxu1 %v4982_v63  ;;  %v4992_v63 = vld [vmem:[#allocation10 + $0x34] ss:$8 sps:$4 sm:$0xff]  }
 0x20d   :  { %1465 = vmatpush1.bf16.msra.mxu0 %v4870_v23 }
 0x20e   :  { %1466 = vmatprep.subr.bf16.mxu0 %v4875_v24 }
 0x211   :  { %1467 = vmatpush1.bf16.msra.mxu0 %v4873_v25 }
 0x212   :  { %1468 = vmatprep.subr.bf16.mxu0 %v4878_v26 }
 0x215   :  { %1469 = vmatpush1.bf16.msra.mxu0 %v4876_v29 }
 0x216   :  { %1686 = vmatprep.subr.bf16.mxu0 %v4883_v30 }
 0x218   :  { %1471 = vmatmul.mubr.bf16.vlgmr.msra.gmra.mrb[8].mxu0 %v1272_v36  ;;  %v2297_v36 = vld [vmem:[#allocation3] sm:$0xcc] }
 0x219   :  { %1687 = vmatpush1.bf16.msra.mxu0 %v4881_v34  ;;  %1718 = vmatprep.mubr.bf16.mxu0 %v4209_v18  ;;  %v2577_v18 = vld [vmem:[#allocation3] sm:$0x88] }
 0x21a   :  { %1688 = vmatprep.subr.bf16.mxu0 %v4888_v35  ;;  %v1802_v35 = vld [vmem:[#allocation3] sm:$0xee] }
 0x21d   :  { %1689 = vmatpush1.bf16.msra.mxu0 %v4886_v19 }
 0x21e   :  { %1690 = vmatprep.subr.bf16.mxu0 %v4891_v37 }
 0x221   :  { %1691 = vmatpush1.bf16.msra.mxu0 %v4889_v38 }
 0x222   :  { %1692 = vmatprep.subr.bf16.mxu0 %v4894_v39 }
 0x225   :  { %1693 = vmatpush1.bf16.msra.mxu0 %v4892_v40 }
 0x226   :  { %1694 = vmatprep.subr.bf16.mxu0 %v4897_v41 }
 0x229   :  { %1695 = vmatpush1.bf16.msra.mxu0 %v4895_v42  ;;  %v2300_v42 = vld [vmem:[#allocation3 + $0x18] sm:$0x11] }
 0x22a   :  { %1696 = vmatprep.subr.bf16.mxu0 %v4900_v43  ;;  %v2578_v43 = vld [vmem:[#allocation3 + $0x18] sm:$0x33] }
 0x22d   :  { %1697 = vmatpush1.bf16.msra.mxu0 %v4898_v44 }
 0x22e   :  { %1698 = vmatprep.subr.bf16.mxu0 %v4903_v45 }
 0x231   :  { %1699 = vmatpush1.bf16.msra.mxu0 %v4901_v46 }
 0x232   :  { %1700 = vmatprep.subr.bf16.mxu0 %v4906_v47 }
 0x235   :  { %1701 = vmatpush1.bf16.msra.mxu0 %v4904_v48 }
 0x236   :  { %1702 = vmatprep.subr.bf16.mxu0 %v4909_v49 }
 0x239   :  { %1703 = vmatpush1.bf16.msra.mxu0 %v4907_v50 }
 0x23a   :  { %1704 = vmatprep.subr.bf16.mxu0 %v4912_v51 }
 0x23d   :  { %1705 = vmatpush1.bf16.msra.mxu0 %v4910_v52 }
 0x23e   :  { %1706 = vmatprep.subr.bf16.mxu0 %v4915_v53 }
 0x241   :  { %1707 = vmatpush1.bf16.msra.mxu0 %v4913_v54 }
 0x242   :  { %1708 = vmatprep.subr.bf16.mxu0 %v4918_v55 }
 0x245   :  { %1709 = vmatpush1.bf16.msra.mxu0 %v4916_v56 }
 0x246   :  { %1710 = vmatprep.subr.bf16.mxu0 %v4921_v57 }
 0x249   :  { %1711 = vmatpush1.bf16.msra.mxu0 %v4919_v58 }
 0x24a   :  { %1712 = vmatprep.subr.bf16.mxu0 %v4924_v59 }
 0x24d   :  { %1713 = vmatpush1.bf16.msra.mxu0 %v4922_v60 }
 0x24e   :  { %1714 = vmatprep.subr.bf16.mxu0 %v4927_v61  ;;  %v4980_v61 = vld [vmem:[#allocation10] ss:$8 sps:$4 sm:$0xff]  }
 0x251   :  { %1715 = vmatpush1.bf16.msra.mxu0 %v4925_v62 }
 0x252   :  { %1716 = vmatprep.subr.bf16.mxu0 %v4930_v0 }
 0x255   :  { %1717 = vmatpush1.bf16.msra.mxu0 %v4928_v1 }
 0x258   :  { %1719 = vmatmul.mubr.bf16.vlgmr.msra.gmra.mrb[8].mxu0 %v4208_v2 }
 0x32b   :  { %v1720_v21 = vpop.f32.mrb[8].mxu0 }
 0x32c   :  { %v1745_v22 = vadd.f32 %v1738_v17, %v1720_v21  ;;  %v1722_v23 = vpop.f32.mrb[9].mxu0  ;;  %v4993_v21 = vld [vmem:[#allocation10 + $0x40] ss:$8 sps:$4 sm:$0xff]  }
 0x32d   :  { %v1746_v24 = vadd.f32 %v1742_v20, %v1722_v23  ;;  %v1724_v25 = vpop.f32.mrb[10].mxu0  ;;  %v4996_v23 = vld [vmem:[#allocation10 + $0x50] ss:$8 sps:$4 sm:$0xff]  }
 0x32e   :  { %v1749_v26 = vmax.f32 %v1745_v22, 0.0  ;;  %v1747_v27 = vadd.f32 %v1738_v17, %v1724_v25  ;;  %v1726_v28 = vpop.f32.mrb[11].mxu0  ;;  %v4990_v17 = vld [vmem:[#allocation10 + $0x30] ss:$8 sps:$4 sm:$0xff]   ;;  %v4998_v22 = vld [vmem:[#allocation10 + $0x54] ss:$8 sps:$4 sm:$0xff]  }
 0x32f   :  { %v1750_v29 = vmax.f32 %v1746_v24, 0.0  ;;  %v1748_v30 = vadd.f32 %v1742_v20, %v1726_v28  ;;  %v4995_v20 = vld [vmem:[#allocation10 + $0x44] ss:$8 sps:$4 sm:$0xff]   ;;  %v4999_v25 = vld [vmem:[#allocation10 + $0x60] ss:$8 sps:$4 sm:$0xff]  }
 0x330   :  { %v1751_v31 = vmax.f32 %v1747_v27, 0.0  ;;  %v5001_v24 = vld [vmem:[#allocation10 + $0x64] ss:$8 sps:$4 sm:$0xff]   ;;  %v5002_v27 = vld [vmem:[#allocation10 + $0x70] ss:$8 sps:$4 sm:$0xff]  }
 0x331   :  { %v5584_v32 = vpack.c.bf16 %v1750_v29, %v1749_v26  ;;  %v1752_v33 = vmax.f32 %v1748_v30, 0.0  ;;  %v5004_v26 = vld [vmem:[#allocation10 + $0x74] ss:$8 sps:$4 sm:$0xff]   ;;  %v5007_v28 = vld [vmem:[#allocation10 + $0x84] ss:$8 sps:$4 sm:$0xff]  }
 0x332   :  { %v5005_v29 = vld [vmem:[#allocation10 + $0x80] ss:$8 sps:$4 sm:$0xff]   ;;  %v5010_v30 = vld [vmem:[#allocation10 + $0x94] ss:$8 sps:$4 sm:$0xff]  }
 0x333   :  { %v4519_v34 = vpack.c.bf16 %v1752_v33, %v1751_v31  ;;  %v4245_v19 = vcombine.high %v1802_v35, %v5584_v32  ;;  %v4244_v37 = vcombine.low %v1802_v35, %v5584_v32  ;;  %v4316_v38 = vcombine.low %v2297_v36, %v5584_v32  ;;  %v5008_v31 = vld [vmem:[#allocation10 + $0x90] ss:$8 sps:$4 sm:$0xff]   ;;  %v5013_v33 = vld [vmem:[#allocation10 + $0xa4] ss:$8 sps:$4 sm:$0xff]   ;;  %v5016_v35 = vld [vmem:[#allocation10 + $0xb4] ss:$8 sps:$4 sm:$0xff]  }
 0x334   :  { %v4317_v39 = vcombine.high %v2297_v36, %v5584_v32  ;;  %v4352_v40 = vcombine.low %v2577_v18, %v5584_v32  ;;  %v4353_v41 = vcombine.high %v2577_v18, %v5584_v32  ;;  %v4281_v16 = vcombine.high %v5539_v8, %v5584_v32  ;;  %v5014_v36 = vld [vmem:[#allocation10 + $0xb0] ss:$8 sps:$4 sm:$0xff]   ;;  %v5019_v18 = vld [vmem:[#allocation10 + $0xc4] ss:$8 sps:$4 sm:$0xff]  }
 0x335   :  { %1766 = vst [vmem:[#allocation3 + $0x10] sm:$0x77] %v4519_v34  ;;  %v1854_v45 = vrot.slane %v4245_v19, 1  ;;  %v1851_v46 = vrot.slane %v4244_v37, 1  ;;  %v2350_v47 = vrot.slane %v4316_v38, 2 }
 0x336   :  { %v2353_v48 = vrot.slane %v4317_v39, 2  ;;  %v2622_v51 = vrot.slane %v4352_v40, 3  ;;  %v2625_v52 = vrot.slane %v4353_v41, 3  ;;  %v5011_v34 = vld [vmem:[#allocation10 + $0xa0] ss:$8 sps:$4 sm:$0xff]  }
 0x337   :  { %v5017_v19 = vld [vmem:[#allocation10 + $0xc0] ss:$8 sps:$4 sm:$0xff]   ;;  %v5022_v37 = vld [vmem:[#allocation10 + $0xd4] ss:$8 sps:$4 sm:$0xff]   ;;  %v5020_v38 = vld [vmem:[#allocation10 + $0xd0] ss:$8 sps:$4 sm:$0xff]  }
 0x338   :  { %v5025_v39 = vld [vmem:[#allocation10 + $0xe4] ss:$8 sps:$4 sm:$0xff]   ;;  %v5023_v40 = vld [vmem:[#allocation10 + $0xe0] ss:$8 sps:$4 sm:$0xff]   ;;  %v5028_v41 = vld [vmem:[#allocation10 + $0xf4] ss:$8 sps:$4 sm:$0xff]  }
 0x33c   :  { %v5592_v44 = vld [vmem:[#allocation3 + $0x10] sm:$0xff] }
 0x33d   :  { %v4247_v49 = vcombine.high %v5592_v44, %v5592_v44  ;;  %v4246_v50 = vcombine.low %v5592_v44, %v5592_v44  ;;  %v4318_v53 = vcombine.low %v5592_v44, %v2300_v42  ;;  %v4319_v54 = vcombine.high %v5592_v44, %v2300_v42  ;;  %v5026_v42 = vld [vmem:[#allocation10 + $0xf0] ss:$8 sps:$4 sm:$0xff]  }
 0x33e   :  { %v4354_v55 = vcombine.low %v5592_v44, %v2578_v43  ;;  %v4355_v56 = vcombine.high %v5592_v44, %v2578_v43  ;;  %v4389_v59 = vcombine.high %v5584_v32, %v5592_v44  ;;  %v4388_v60 = vcombine.low %v5584_v32, %v5592_v44  ;;  %v5031_v43 = vld [vmem:[#allocation10 + $0x204] ss:$8 sps:$4 sm:$0xff]   ;;  %v5188_v44 = vld [vmem:[#allocation12 + $0x58] sm:$0xff]  }
 0x33f   :  { %v1855_v57 = vrot.slane %v4247_v49, 1  ;;  %v1852_v58 = vrot.slane %v4246_v50, 1  ;;  %v5606_v62 = vrot.slane %v4318_v53, 2  ;;  %v5608_v0 = vrot.slane %v4319_v54, 2  ;;  %v5033_v50 = vld [vmem:[#allocation10 + $0x210] ss:$8 sps:$4 sm:$0xff]  }
 0x340   :  { %v5610_v1 = vrot.slane %v4354_v55, 3  ;;  %v5612_v2 = vrot.slane %v4355_v56, 3  ;;  %v5044_v54 = vld [vmem:[#allocation10 + $0x234] ss:$8 sps:$4 sm:$0xff]   ;;  %v5042_v55 = vld [vmem:[#allocation10 + $0x230] ss:$8 sps:$4 sm:$0xff]  }
 0x341   :  { %v1856_v3 = vsel %vm1850_vm3, %v1854_v45, %v1855_v57  ;;  %v1853_v4 = vsel %vm1850_vm3, %v1851_v46, %v1852_v58  ;;  %v5618_v7 = vsel %vm1008_vm1, %v2353_v48, %v5608_v0  ;;  %v5622_v10 = vsel %vm1008_vm1, %v2350_v47, %v5606_v62  ;;  %v1769_v45 = vld [vmem:[#allocation3 + $0x10] sm:$0x77]  ;;  %v5035_v48 = vld [vmem:[#allocation10 + $0x214] ss:$8 sps:$4 sm:$0xff]  }
 0x342   :  { %2053 = vmatprep.mubr.bf16.mxu1 %v1856_v3  ;;  %v5626_v11 = vsel %vm1269_vm2, %v2625_v52, %v5612_v2  ;;  %v5630_v12 = vsel %vm1269_vm2, %v2622_v51, %v5610_v1  ;;  %v5029_v46 = vld [vmem:[#allocation10 + $0x200] ss:$8 sps:$4 sm:$0xff]   ;;  %v4280_v47 = vcombine.low %v5539_v8, %v5584_v32  ;;  %v4283_v49 = vcombine.high %v1769_v45, %v1769_v45  ;;  %v5039_v51 = vld [vmem:[#allocation10 + $0x224] ss:$8 sps:$4 sm:$0xff]   ;;  %v5186_v32 = vld [vmem:[#allocation12 + $0x10] sm:$0xff]  }
 0x343   :  { %2054 = vmatmul.mubr.bf16.vlgmr.msra.gmra.mrb[8].mxu1 %v1853_v4  ;;  %v5037_v52 = vld [vmem:[#allocation10 + $0x220] ss:$8 sps:$4 sm:$0xff]   ;;  %v4282_v53 = vcombine.low %v1769_v45, %v1769_v45  ;;  %v5047_v8 = vld [vmem:[#allocation10 + $0x244] ss:$8 sps:$4 sm:$0xff]   ;;  %v5056_v4 = vld [vmem:[#allocation10 + $0x274] ss:$8 sps:$4 sm:$0xff]  }
 0x344   :  { %2247 = vmatpush1.bf16.msra.mxu1 %v4980_v61  ;;  %2063 = vmatprep.mubr.bf16.mxu1 %v1855_v57  ;;  %v5045_v56 = vld [vmem:[#allocation10 + $0x240] ss:$8 sps:$4 sm:$0xff]   ;;  %v5050_v57 = vld [vmem:[#allocation10 + $0x254] ss:$8 sps:$4 sm:$0xff]   ;;  %v5053_v61 = vld [vmem:[#allocation10 + $0x264] ss:$8 sps:$4 sm:$0xff]  }
 0x345   :  { %2248 = vmatprep.subr.bf16.mxu1 %v4986_v5  ;;  %v5051_v3 = vld [vmem:[#allocation10 + $0x260] ss:$8 sps:$4 sm:$0xff]   ;;  %v5054_v5 = vld [vmem:[#allocation10 + $0x270] ss:$8 sps:$4 sm:$0xff]   ;;  %v5115_v45 = vld [vmem:[#allocation10 + $0x3a4] ss:$8 sps:$4 sm:$0xff]  }
 0x348   :  { %2249 = vmatpush1.bf16.msra.mxu1 %v4984_v13  ;;  %v5059_v13 = vld [vmem:[#allocation10 + $0x284] ss:$8 sps:$4 sm:$0xff]  }
 0x349   :  { %2250 = vmatprep.subr.bf16.mxu1 %v4989_v14  ;;  %v5062_v14 = vld [vmem:[#allocation10 + $0x294] ss:$8 sps:$4 sm:$0xff]  }
 0x34b   :  { %2064 = vmatmul.mubr.bf16.gmra.mrb[12].mxu1 %v1852_v58  ;;  %v5048_v58 = vld [vmem:[#allocation10 + $0x250] ss:$8 sps:$4 sm:$0xff]  }
 0x34c   :  { %2251 = vmatpush1.bf16.msra.mxu1 %v4987_v15  ;;  %2278 = vmatprep.mubr.bf16.mxu1 %v4281_v16  ;;  %v5060_v15 = vld [vmem:[#allocation10 + $0x290] ss:$8 sps:$4 sm:$0xff]   ;;  %v5063_v16 = vld [vmem:[#allocation10 + $0x2a0] ss:$8 sps:$4 sm:$0xff]  }
 0x34d   :  { %2252 = vmatprep.subr.bf16.mxu1 %v4992_v63  ;;  %v5065_v63 = vld [vmem:[#allocation10 + $0x2a4] ss:$8 sps:$4 sm:$0xff]  }
 0x350   :  { %2253 = vmatpush1.bf16.msra.mxu1 %v4990_v17  ;;  %v5068_v17 = vld [vmem:[#allocation10 + $0x2b4] ss:$8 sps:$4 sm:$0xff]  }
 0x351   :  { %2254 = vmatprep.subr.bf16.mxu1 %v4995_v20  ;;  %v5066_v20 = vld [vmem:[#allocation10 + $0x2b0] ss:$8 sps:$4 sm:$0xff]  }
 0x354   :  { %2255 = vmatpush1.bf16.msra.mxu1 %v4993_v21  ;;  %v5071_v21 = vld [vmem:[#allocation10 + $0x2c4] ss:$8 sps:$4 sm:$0xff]  }
 0x355   :  { %2256 = vmatprep.subr.bf16.mxu1 %v4998_v22  ;;  %v5069_v22 = vld [vmem:[#allocation10 + $0x2c0] ss:$8 sps:$4 sm:$0xff]  }
 0x358   :  { %2257 = vmatpush1.bf16.msra.mxu1 %v4996_v23  ;;  %v5074_v23 = vld [vmem:[#allocation10 + $0x2d4] ss:$8 sps:$4 sm:$0xff]  }
 0x359   :  { %2258 = vmatprep.subr.bf16.mxu1 %v5001_v24  ;;  %v5072_v24 = vld [vmem:[#allocation10 + $0x2d0] ss:$8 sps:$4 sm:$0xff]  }
 0x35c   :  { %2259 = vmatpush1.bf16.msra.mxu1 %v4999_v25  ;;  %v5077_v25 = vld [vmem:[#allocation10 + $0x2e4] ss:$8 sps:$4 sm:$0xff]  }
 0x35d   :  { %2260 = vmatprep.subr.bf16.mxu1 %v5004_v26  ;;  %v5075_v26 = vld [vmem:[#allocation10 + $0x2e0] ss:$8 sps:$4 sm:$0xff]  }
 0x360   :  { %2261 = vmatpush1.bf16.msra.mxu1 %v5002_v27  ;;  %v5080_v27 = vld [vmem:[#allocation10 + $0x2f4] ss:$8 sps:$4 sm:$0xff]  }
 0x361   :  { %2262 = vmatprep.subr.bf16.mxu1 %v5007_v28  ;;  %v5078_v28 = vld [vmem:[#allocation10 + $0x2f0] ss:$8 sps:$4 sm:$0xff]  }
 0x364   :  { %2263 = vmatpush1.bf16.msra.mxu1 %v5005_v29  ;;  %v5083_v29 = vld [vmem:[#allocation10 + $0x304] ss:$8 sps:$4 sm:$0xff]  }
 0x365   :  { %2264 = vmatprep.subr.bf16.mxu1 %v5010_v30  ;;  %v5081_v30 = vld [vmem:[#allocation10 + $0x300] ss:$8 sps:$4 sm:$0xff]  }
 0x368   :  { %2265 = vmatpush1.bf16.msra.mxu1 %v5008_v31  ;;  %v5086_v31 = vld [vmem:[#allocation10 + $0x314] ss:$8 sps:$4 sm:$0xff]  }
 0x369   :  { %2266 = vmatprep.subr.bf16.mxu1 %v5013_v33  ;;  %v5084_v33 = vld [vmem:[#allocation10 + $0x310] ss:$8 sps:$4 sm:$0xff]  }
 0x36c   :  { %2267 = vmatpush1.bf16.msra.mxu1 %v5011_v34  ;;  %v5089_v34 = vld [vmem:[#allocation10 + $0x324] ss:$8 sps:$4 sm:$0xff]  }
 0x36d   :  { %2268 = vmatprep.subr.bf16.mxu1 %v5016_v35  ;;  %v5087_v35 = vld [vmem:[#allocation10 + $0x320] ss:$8 sps:$4 sm:$0xff]  }
 0x370   :  { %2269 = vmatpush1.bf16.msra.mxu1 %v5014_v36  ;;  %v5094_v36 = vld [vmem:[#allocation10 + $0x334] ss:$8 sps:$4 sm:$0xff]  }
 0x371   :  { %2270 = vmatprep.subr.bf16.mxu1 %v5019_v18  ;;  %v5092_v18 = vld [vmem:[#allocation10 + $0x330] ss:$8 sps:$4 sm:$0xff]  }
 0x374   :  { %2271 = vmatpush1.bf16.msra.mxu1 %v5017_v19  ;;  %v5097_v19 = vld [vmem:[#allocation10 + $0x344] ss:$8 sps:$4 sm:$0xff]  }
 0x375   :  { %2272 = vmatprep.subr.bf16.mxu1 %v5022_v37  ;;  %v5098_v37 = vld [vmem:[#allocation10 + $0x350] ss:$8 sps:$4 sm:$0xff]  }
 0x378   :  { %2273 = vmatpush1.bf16.msra.mxu1 %v5020_v38  ;;  %v5103_v38 = vld [vmem:[#allocation10 + $0x364] ss:$8 sps:$4 sm:$0xff]  }
 0x379   :  { %2274 = vmatprep.subr.bf16.mxu1 %v5025_v39  ;;  %v5101_v39 = vld [vmem:[#allocation10 + $0x360] ss:$8 sps:$4 sm:$0xff]  }
 0x37c   :  { %2275 = vmatpush1.bf16.msra.mxu1 %v5023_v40  ;;  %v5106_v40 = vld [vmem:[#allocation10 + $0x374] ss:$8 sps:$4 sm:$0xff]  }
 0x37d   :  { %2276 = vmatprep.subr.bf16.mxu1 %v5028_v41  ;;  %v5109_v41 = vld [vmem:[#allocation10 + $0x384] ss:$8 sps:$4 sm:$0xff]  }
 0x380   :  { %2277 = vmatpush1.bf16.msra.mxu1 %v5026_v42  ;;  %v5112_v42 = vld [vmem:[#allocation10 + $0x394] ss:$8 sps:$4 sm:$0xff]  }
 0x381   :  { %2520 = vmatprep.subr.bf16.mxu1 %v5031_v43  ;;  %v5110_v43 = vld [vmem:[#allocation10 + $0x390] ss:$8 sps:$4 sm:$0xff]  }
 0x383   :  { %2279 = vmatmul.mubr.bf16.vlgmr.msra.gmra.mrb[8].mxu1 %v4280_v47  ;;  %v5118_v47 = vld [vmem:[#allocation10 + $0x3b4] ss:$8 sps:$4 sm:$0xff]  }
 0x384   :  { %2288 = vmatprep.mubr.bf16.mxu1 %v4283_v49  ;;  %2521 = vmatpush1.bf16.msra.mxu1 %v5029_v46  ;;  %v5113_v46 = vld [vmem:[#allocation10 + $0x3a0] ss:$8 sps:$4 sm:$0xff]   ;;  %v5121_v49 = vld [vmem:[#allocation10 + $0x3c4] ss:$8 sps:$4 sm:$0xff]  }
 0x385   :  { %2522 = vmatprep.subr.bf16.mxu1 %v5035_v48  ;;  %v5116_v48 = vld [vmem:[#allocation10 + $0x3b0] ss:$8 sps:$4 sm:$0xff]  }
 0x388   :  { %2523 = vmatpush1.bf16.msra.mxu1 %v5033_v50  ;;  %v5119_v50 = vld [vmem:[#allocation10 + $0x3c0] ss:$8 sps:$4 sm:$0xff]  }
 0x389   :  { %2524 = vmatprep.subr.bf16.mxu1 %v5039_v51  ;;  %v5124_v51 = vld [vmem:[#allocation10 + $0x3d4] ss:$8 sps:$4 sm:$0xff]  }
 0x38b   :  { %2289 = vmatmul.mubr.bf16.gmra.mrb[16].mxu1 %v4282_v53  ;;  %v5127_v53 = vld [vmem:[#allocation10 + $0x3e4] ss:$8 sps:$4 sm:$0xff]  }
 0x38c   :  { %2525 = vmatpush1.bf16.msra.mxu1 %v5037_v52  ;;  %2552 = vmatprep.mubr.bf16.mxu1 %v5618_v7  ;;  %v5057_v7 = vld [vmem:[#allocation10 + $0x280] ss:$8 sps:$4 sm:$0xff]   ;;  %v5122_v52 = vld [vmem:[#allocation10 + $0x3d0] ss:$8 sps:$4 sm:$0xff]  }
 0x38d   :  { %2526 = vmatprep.subr.bf16.mxu1 %v5044_v54  ;;  %v5125_v54 = vld [vmem:[#allocation10 + $0x3e0] ss:$8 sps:$4 sm:$0xff]  }
 0x390   :  { %2527 = vmatpush1.bf16.msra.mxu1 %v5042_v55  ;;  %v5130_v55 = vld [vmem:[#allocation10 + $0x3f4] ss:$8 sps:$4 sm:$0xff]  }
 0x391   :  { %2528 = vmatprep.subr.bf16.mxu1 %v5047_v8  ;;  %v5128_v8 = vld [vmem:[#allocation10 + $0x3f0] ss:$8 sps:$4 sm:$0xff]  }
 0x394   :  { %2529 = vmatpush1.bf16.msra.mxu1 %v5045_v56  ;;  %v5133_v56 = vld [vmem:[#allocation10 + $0x404] ss:$8 sps:$4 sm:$0xff]  }
 0x395   :  { %2530 = vmatprep.subr.bf16.mxu1 %v5050_v57  ;;  %v5131_v57 = vld [vmem:[#allocation10 + $0x400] ss:$8 sps:$4 sm:$0xff]  }
 0x398   :  { %2531 = vmatpush1.bf16.msra.mxu1 %v5048_v58  ;;  %v5136_v58 = vld [vmem:[#allocation10 + $0x414] ss:$8 sps:$4 sm:$0xff]  }
 0x399   :  { %2532 = vmatprep.subr.bf16.mxu1 %v5053_v61  ;;  %v5134_v61 = vld [vmem:[#allocation10 + $0x410] ss:$8 sps:$4 sm:$0xff]  }
 0x39c   :  { %2533 = vmatpush1.bf16.msra.mxu1 %v5051_v3  ;;  %v5139_v3 = vld [vmem:[#allocation10 + $0x424] ss:$8 sps:$4 sm:$0xff]  }
 0x39d   :  { %2534 = vmatprep.subr.bf16.mxu1 %v5056_v4  ;;  %v5137_v4 = vld [vmem:[#allocation10 + $0x420] ss:$8 sps:$4 sm:$0xff]  }
 0x3a0   :  { %2535 = vmatpush1.bf16.msra.mxu1 %v5054_v5  ;;  %v5142_v5 = vld [vmem:[#allocation10 + $0x434] ss:$8 sps:$4 sm:$0xff]  }
 0x3a1   :  { %2536 = vmatprep.subr.bf16.mxu1 %v5059_v13  ;;  %v5140_v13 = vld [vmem:[#allocation10 + $0x430] ss:$8 sps:$4 sm:$0xff]  }
 0x3a4   :  { %2537 = vmatpush1.bf16.msra.mxu1 %v5057_v7  ;;  %v5148_v7 = vld [vmem:[#allocation10 + $0x454] ss:$8 sps:$4 sm:$0xff]  }
 0x3a5   :  { %2538 = vmatprep.subr.bf16.mxu1 %v5062_v14  ;;  %v5146_v14 = vld [vmem:[#allocation10 + $0x450] ss:$8 sps:$4 sm:$0xff]  }
 0x3a8   :  { %2539 = vmatpush1.bf16.msra.mxu1 %v5060_v15  ;;  %v5151_v15 = vld [vmem:[#allocation10 + $0x464] ss:$8 sps:$4 sm:$0xff]  }
 0x3a9   :  { %2540 = vmatprep.subr.bf16.mxu1 %v5065_v63  ;;  %v5149_v63 = vld [vmem:[#allocation10 + $0x460] ss:$8 sps:$4 sm:$0xff]  }
 0x3ac   :  { %2541 = vmatpush1.bf16.msra.mxu1 %v5063_v16  ;;  %v5152_v16 = vld [vmem:[#allocation10 + $0x470] ss:$8 sps:$4 sm:$0xff]  }
 0x3ad   :  { %2542 = vmatprep.subr.bf16.mxu1 %v5068_v17  ;;  %v5157_v17 = vld [vmem:[#allocation10 + $0x484] ss:$8 sps:$4 sm:$0xff]  }
 0x3b0   :  { %2543 = vmatpush1.bf16.msra.mxu1 %v5066_v20 }
 0x3b1   :  { %2544 = vmatprep.subr.bf16.mxu1 %v5071_v21 }
 0x3b4   :  { %2545 = vmatpush1.bf16.msra.mxu1 %v5069_v22  ;;  %v5155_v22 = vld [vmem:[#allocation10 + $0x480] ss:$8 sps:$4 sm:$0xff]  }
 0x3b5   :  { %2546 = vmatprep.subr.bf16.mxu1 %v5074_v23 }
 0x3b8   :  { %2547 = vmatpush1.bf16.msra.mxu1 %v5072_v24  ;;  %v5160_v24 = vld [vmem:[#allocation10 + $0x494] ss:$8 sps:$4 sm:$0xff]  }
 0x3b9   :  { %2548 = vmatprep.subr.bf16.mxu1 %v5077_v25  ;;  %v5158_v25 = vld [vmem:[#allocation10 + $0x490] ss:$8 sps:$4 sm:$0xff]  }
 0x3bc   :  { %2549 = vmatpush1.bf16.msra.mxu1 %v5075_v26  ;;  %v5163_v26 = vld [vmem:[#allocation10 + $0x4a4] ss:$8 sps:$4 sm:$0xff]  }
 0x3bd   :  { %2550 = vmatprep.subr.bf16.mxu1 %v5080_v27  ;;  %v5161_v27 = vld [vmem:[#allocation10 + $0x4a0] ss:$8 sps:$4 sm:$0xff]  }
 0x3c0   :  { %2551 = vmatpush1.bf16.msra.mxu1 %v5078_v28  ;;  %v5166_v28 = vld [vmem:[#allocation10 + $0x4b4] ss:$8 sps:$4 sm:$0xff]  }
 0x3c1   :  { %2792 = vmatprep.subr.bf16.mxu1 %v5083_v29  ;;  %v5164_v29 = vld [vmem:[#allocation10 + $0x4b0] ss:$8 sps:$4 sm:$0xff]  }
 0x3c3   :  { %2553 = vmatmul.mubr.bf16.vlgmr.msra.gmra.mrb[8].mxu1 %v5622_v10  ;;  %v5095_v10 = vld [vmem:[#allocation10 + $0x340] ss:$8 sps:$4 sm:$0xff]  }
 0x3c4   :  { %2562 = vmatprep.mubr.bf16.mxu1 %v5608_v0  ;;  %2793 = vmatpush1.bf16.msra.mxu1 %v5081_v30  ;;  %v5100_v0 = vld [vmem:[#allocation10 + $0x354] ss:$8 sps:$4 sm:$0xff]   ;;  %v5169_v30 = vld [vmem:[#allocation10 + $0x4c4] ss:$8 sps:$4 sm:$0xff]  }
 0x3c5   :  { %2794 = vmatprep.subr.bf16.mxu1 %v5086_v31  ;;  %v5167_v31 = vld [vmem:[#allocation10 + $0x4c0] ss:$8 sps:$4 sm:$0xff]  }
 0x3c8   :  { %2795 = vmatpush1.bf16.msra.mxu1 %v5084_v33  ;;  %v5172_v33 = vld [vmem:[#allocation10 + $0x4d4] ss:$8 sps:$4 sm:$0xff]  }
 0x3c9   :  { %2796 = vmatprep.subr.bf16.mxu1 %v5089_v34  ;;  %v5170_v34 = vld [vmem:[#allocation10 + $0x4d0] ss:$8 sps:$4 sm:$0xff]  }
 0x3cb   :  { %2563 = vmatmul.mubr.bf16.gmra.mrb[20].mxu1 %v5606_v62  ;;  %v5104_v62 = vld [vmem:[#allocation10 + $0x370] ss:$8 sps:$4 sm:$0xff]  }
 0x3cc   :  { %2797 = vmatpush1.bf16.msra.mxu1 %v5087_v35  ;;  %2824 = vmatprep.mubr.bf16.mxu1 %v5626_v11  ;;  %v5107_v11 = vld [vmem:[#allocation10 + $0x380] ss:$8 sps:$4 sm:$0xff]   ;;  %v5175_v35 = vld [vmem:[#allocation10 + $0x4e4] ss:$8 sps:$4 sm:$0xff]  }
 0x3cd   :  { %2798 = vmatprep.subr.bf16.mxu1 %v5094_v36  ;;  %v5173_v36 = vld [vmem:[#allocation10 + $0x4e0] ss:$8 sps:$4 sm:$0xff]  }
 0x3d0   :  { %2799 = vmatpush1.bf16.msra.mxu1 %v5092_v18  ;;  %v5178_v18 = vld [vmem:[#allocation10 + $0x4f4] ss:$8 sps:$4 sm:$0xff]  }
 0x3d1   :  { %2800 = vmatprep.subr.bf16.mxu1 %v5097_v19  ;;  %v5176_v19 = vld [vmem:[#allocation10 + $0x4f0] ss:$8 sps:$4 sm:$0xff]  }
 0x3d4   :  { %2801 = vmatpush1.bf16.msra.mxu1 %v5095_v10  ;;  %v2849_v10 = vld [vmem:[#allocation3 + $0x18] sm:$0x77] }
 0x3d5   :  { %2802 = vmatprep.subr.bf16.mxu1 %v5100_v0  ;;  %v4391_v0 = vcombine.high %v2849_v10, %v2849_v10 }
 0x3d8   :  { %2803 = vmatpush1.bf16.msra.mxu1 %v5098_v37  ;;  %v4390_v37 = vcombine.low %v2849_v10, %v2849_v10 }
 0x3d9   :  { %2804 = vmatprep.subr.bf16.mxu1 %v5103_v38 }
 0x3dc   :  { %2805 = vmatpush1.bf16.msra.mxu1 %v5101_v39 }
 0x3dd   :  { %2806 = vmatprep.subr.bf16.mxu1 %v5106_v40 }
 0x3e0   :  { %2807 = vmatpush1.bf16.msra.mxu1 %v5104_v62 }
 0x3e1   :  { %2808 = vmatprep.subr.bf16.mxu1 %v5109_v41 }
 0x3e4   :  { %2809 = vmatpush1.bf16.msra.mxu1 %v5107_v11 }
 0x3e5   :  { %2810 = vmatprep.subr.bf16.mxu1 %v5112_v42  ;;  %v5181_v42 = vld [vmem:[#allocation12 + $0x40] sm:$0xff]  }
 0x3e8   :  { %2811 = vmatpush1.bf16.msra.mxu1 %v5110_v43  ;;  %v5182_v43 = vld [vmem:[#allocation12] sm:$0xff]  }
 0x3e9   :  { %2812 = vmatprep.subr.bf16.mxu1 %v5115_v45  ;;  %v5183_v45 = vld [vmem:[#allocation12 + $0x48] sm:$0xff]  }
 0x3ec   :  { %2813 = vmatpush1.bf16.msra.mxu1 %v5113_v46  ;;  %v5184_v46 = vld [vmem:[#allocation12 + $0x8] sm:$0xff]  }
 0x3ed   :  { %2814 = vmatprep.subr.bf16.mxu1 %v5118_v47  ;;  %v5185_v47 = vld [vmem:[#allocation12 + $0x50] sm:$0xff]  }
 0x3f0   :  { %2815 = vmatpush1.bf16.msra.mxu1 %v5116_v48  ;;  %v5187_v48 = vld [vmem:[#allocation12 + $0xc0] sm:$0xff]  }
 0x3f1   :  { %2816 = vmatprep.subr.bf16.mxu1 %v5121_v49  ;;  %v5189_v49 = vld [vmem:[#allocation12 + $0x80] sm:$0xff]   ;;  %4523 = vmatprep.subr.bf16.mxu0 %v5187_v48 }
 0x3f2   :  { %4524 = vmatpush3.bf16.msra.mxu0 %v5189_v49 }
 0x3f4   :  { %2817 = vmatpush1.bf16.msra.mxu1 %v5119_v50  ;;  %v5192_v50 = vld [vmem:[#allocation12 + $0x60] sm:$0xff]  }
 0x3f5   :  { %2818 = vmatprep.subr.bf16.mxu1 %v5124_v51  ;;  %v5194_v51 = vld [vmem:[#allocation12 + $0x20] sm:$0xff]  }
 0x3f8   :  { %2819 = vmatpush1.bf16.msra.mxu1 %v5122_v52  ;;  %v5191_v52 = vld [vmem:[#allocation12 + $0xc8] sm:$0xff]  }
 0x3f9   :  { %2820 = vmatprep.subr.bf16.mxu1 %v5127_v53  ;;  %v5193_v53 = vld [vmem:[#allocation12 + $0x88] sm:$0xff]   ;;  %4525 = vmatprep.subr.bf16.mxu0 %v5191_v52 }
 0x3fa   :  { %4526 = vmatpush3.bf16.msra.mxu0 %v5193_v53 }
 0x3fc   :  { %2821 = vmatpush1.bf16.msra.mxu1 %v5125_v54  ;;  %v5196_v54 = vld [vmem:[#allocation12 + $0x68] sm:$0xff]  }
 0x3fd   :  { %2822 = vmatprep.subr.bf16.mxu1 %v5130_v55 }
 0x400   :  { %2823 = vmatpush1.bf16.msra.mxu1 %v5128_v8  ;;  %v5198_v8 = vld [vmem:[#allocation12 + $0x28] sm:$0xff]  }
 0x401   :  { %3054 = vmatprep.subr.bf16.mxu1 %v5133_v56 }
 0x403   :  { %2825 = vmatmul.mubr.bf16.vlgmr.msra.gmra.mrb[8].mxu1 %v5630_v12  ;;  %v5145_v12 = vld [vmem:[#allocation10 + $0x444] ss:$8 sps:$4 sm:$0xff]  }
 0x404   :  { %2834 = vmatprep.mubr.bf16.mxu1 %v5612_v2  ;;  %3055 = vmatpush1.bf16.msra.mxu1 %v5131_v57  ;;  %v5143_v2 = vld [vmem:[#allocation10 + $0x440] ss:$8 sps:$4 sm:$0xff]  }
 0x405   :  { %3056 = vmatprep.subr.bf16.mxu1 %v5136_v58 }
 0x408   :  { %3057 = vmatpush1.bf16.msra.mxu1 %v5134_v61 }
 0x409   :  { %3058 = vmatprep.subr.bf16.mxu1 %v5139_v3  ;;  %v5195_v3 = vld [vmem:[#allocation12 + $0xd0] sm:$0xff]  }
 0x40a   :  { %4527 = vmatprep.subr.bf16.mxu0 %v5195_v3  ;;  %v5212_v3 = vld [vmem:[#allocation12 + $0x1c8] sm:$0xff]  }
 0x40b   :  { %2835 = vmatmul.mubr.bf16.gmra.mrb[24].mxu1 %v5610_v1  ;;  %v5154_v1 = vld [vmem:[#allocation10 + $0x474] ss:$8 sps:$4 sm:$0xff]  }
 0x40c   :  { %3059 = vmatpush1.bf16.msra.mxu1 %v5137_v4  ;;  %3086 = vmatprep.mubr.bf16.mxu1 %v4389_v59 }
 0x40d   :  { %3060 = vmatprep.subr.bf16.mxu1 %v5142_v5  ;;  %v5197_v5 = vld [vmem:[#allocation12 + $0x90] sm:$0xff]  }
 0x40e   :  { %4528 = vmatpush3.bf16.msra.mxu0 %v5197_v5 }
 0x410   :  { %3061 = vmatpush1.bf16.msra.mxu1 %v5140_v13  ;;  %v5200_v13 = vld [vmem:[#allocation12 + $0x70] sm:$0xff]  }
 0x411   :  { %3062 = vmatprep.subr.bf16.mxu1 %v5145_v12  ;;  %v5202_v12 = vld [vmem:[#allocation12 + $0x30] sm:$0xff]  }
 0x414   :  { %3063 = vmatpush1.bf16.msra.mxu1 %v5143_v2  ;;  %v5199_v2 = vld [vmem:[#allocation12 + $0xd8] sm:$0xff]  }
 0x415   :  { %3064 = vmatprep.subr.bf16.mxu1 %v5148_v7  ;;  %v5201_v7 = vld [vmem:[#allocation12 + $0x98] sm:$0xff]   ;;  %4529 = vmatprep.subr.bf16.mxu0 %v5199_v2 }
 0x416   :  { %4530 = vmatpush3.bf16.msra.mxu0 %v5201_v7  ;;  %v5216_v7 = vld [vmem:[#allocation12 + $0x1d0] sm:$0xff]  }
 0x418   :  { %3065 = vmatpush1.bf16.msra.mxu1 %v5146_v14  ;;  %v5204_v14 = vld [vmem:[#allocation12 + $0x78] sm:$0xff]  }
 0x419   :  { %3066 = vmatprep.subr.bf16.mxu1 %v5151_v15  ;;  %v5206_v15 = vld [vmem:[#allocation12 + $0x38] sm:$0xff]  }
 0x41c   :  { %3067 = vmatpush1.bf16.msra.mxu1 %v5149_v63  ;;  %v5203_v63 = vld [vmem:[#allocation12 + $0xe0] sm:$0xff]  }
 0x41d   :  { %3068 = vmatprep.subr.bf16.mxu1 %v5154_v1  ;;  %v5205_v1 = vld [vmem:[#allocation12 + $0xa0] sm:$0xff]   ;;  %4531 = vmatprep.subr.bf16.mxu0 %v5203_v63 }
 0x41e   :  { %v2065_v59 = vpop.f32.mrb[12].mxu1  ;;  %4532 = vmatpush3.bf16.msra.mxu0 %v5205_v1  ;;  %v5218_v1 = vld [vmem:[#allocation12 + $0x190] sm:$0xff]  }
 0x41f   :  { %v2067_v20 = vpop.f32.mrb[13].mxu1 }
 0x420   :  { %3069 = vmatpush1.bf16.msra.mxu1 %v5152_v16  ;;  %v2069_v21 = vpop.f32.mrb[14].mxu1  ;;  %v5208_v16 = vld [vmem:[#allocation12 + $0x1c0] sm:$0xff]  }
 0x421   :  { %v2070_v23 = vpop.f32.mrb[15].mxu1  ;;  %3070 = vmatprep.subr.bf16.mxu1 %v5157_v17  ;;  %v5207_v17 = vld [vmem:[#allocation12 + $0xe8] sm:$0xff]   ;;  %v5213_v21 = vld [vmem:[#allocation12 + $0xb0] sm:$0xff]  }
 0x422   :  { %4533 = vmatprep.subr.bf16.mxu0 %v5207_v17  ;;  %v5217_v23 = vld [vmem:[#allocation12 + $0xb8] sm:$0xff]  }
 0x424   :  { %3071 = vmatpush1.bf16.msra.mxu1 %v5155_v22  ;;  %v5215_v22 = vld [vmem:[#allocation12 + $0xf8] sm:$0xff]  }
 0x425   :  { %3072 = vmatprep.subr.bf16.mxu1 %v5160_v24  ;;  %v5219_v24 = vld [vmem:[#allocation12 + $0x140] sm:$0xff]  }
 0x428   :  { %3073 = vmatpush1.bf16.msra.mxu1 %v5158_v25 }
 0x429   :  { %3074 = vmatprep.subr.bf16.mxu1 %v5163_v26 }
 0x42c   :  { %3075 = vmatpush1.bf16.msra.mxu1 %v5161_v27 }
 0x42d   :  { %3076 = vmatprep.subr.bf16.mxu1 %v5166_v28 }
 0x430   :  { %3077 = vmatpush1.bf16.msra.mxu1 %v5164_v29 }
 0x431   :  { %3078 = vmatprep.subr.bf16.mxu1 %v5169_v30 }
 0x434   :  { %3079 = vmatpush1.bf16.msra.mxu1 %v5167_v31  ;;  %v3111_v31 = vld [vmem:[%s5712_s6] sm:$0x3] }
 0x435   :  { %3080 = vmatprep.subr.bf16.mxu1 %v5172_v33  ;;  %v3116_v33 = vrot.slane %v3111_v31, %v5524_v6 }
 0x438   :  { %3081 = vmatpush1.bf16.msra.mxu1 %v5170_v34  ;;  %v3120_v34 = vrot.slane %v3111_v31, %v5529_v9  ;;  %v5222_v31 = vld [vmem:[#allocation12 + $0x198] sm:$0xff]  }
 0x439   :  { %3082 = vmatprep.subr.bf16.mxu1 %v5175_v35 }
 0x43c   :  { %3083 = vmatpush1.bf16.msra.mxu1 %v5173_v36 }
 0x43d   :  { %3084 = vmatprep.subr.bf16.mxu1 %v5178_v18 }
 0x440   :  { %3085 = vmatpush1.bf16.msra.mxu1 %v5176_v19 }
 0x441   :  { %4551 = vmatprep.subr.bf16.mxu1 %v5181_v42 }
 0x443   :  { %3087 = vmatmul.mubr.bf16.vlgmr.msra.gmra.mrb[8].mxu1 %v4388_v60  ;;  %v5190_v60 = vld [vmem:[#allocation12 + $0x18] sm:$0xff]  }
 0x444   :  { %3096 = vmatprep.mubr.bf16.mxu1 %v4391_v0  ;;  %4552 = vmatpush3.bf16.msra.mxu1 %v5182_v43 }
 0x445   :  { %4553 = vmatprep.subr.bf16.mxu1 %v5183_v45 }
 0x448   :  { %4554 = vmatpush3.bf16.msra.mxu1 %v5184_v46 }
 0x449   :  { %4555 = vmatprep.subr.bf16.mxu1 %v5185_v47 }
 0x44b   :  { %3097 = vmatmul.mubr.bf16.gmra.mrb[28].mxu1 %v4390_v37 }
 0x44c   :  { %4556 = vmatpush3.bf16.msra.mxu1 %v5186_v32 }
 0x44d   :  { %4557 = vmatprep.subr.bf16.mxu1 %v5188_v44 }
 0x450   :  { %4558 = vmatpush3.bf16.msra.mxu1 %v5190_v60 }
 0x451   :  { %4559 = vmatprep.subr.bf16.mxu1 %v5192_v50 }
 0x454   :  { %4560 = vmatpush3.bf16.msra.mxu1 %v5194_v51 }
 0x455   :  { %4561 = vmatprep.subr.bf16.mxu1 %v5196_v54 }
 0x458   :  { %4562 = vmatpush3.bf16.msra.mxu1 %v5198_v8 }
 0x459   :  { %4563 = vmatprep.subr.bf16.mxu1 %v5200_v13 }
 0x45c   :  { %4564 = vmatpush3.bf16.msra.mxu1 %v5202_v12  ;;  %v5214_v12 = vld [vmem:[#allocation12 + $0x188] sm:$0xff]  }
 0x45d   :  { %4565 = vmatprep.subr.bf16.mxu1 %v5204_v14 }
 0x45e   :  { %v2290_v38 = vpop.f32.mrb[16].mxu1 }
 0x45f   :  { %v2291_v39 = vadd.f32 %v2290_v38, %v2065_v59  ;;  %v2292_v40 = vpop.f32.mrb[17].mxu1  ;;  %v5209_v59 = vld [vmem:[#allocation12 + $0xa8] sm:$0xff]  }
 0x460   :  { %v2293_v62 = vadd.f32 %v2292_v40, %v2067_v20  ;;  %v2294_v41 = vpop.f32.mrb[18].mxu1  ;;  %4566 = vmatpush3.bf16.msra.mxu1 %v5206_v15  ;;  %v5211_v20 = vld [vmem:[#allocation12 + $0xf0] sm:$0xff]   ;;  %4534 = vmatpush3.bf16.msra.mxu0 %v5209_v59 }
 0x461   :  { %v2295_v11 = vpop.f32.mrb[19].mxu1  ;;  %4607 = vmatprep.subr.bf16.mxu1 %v5208_v16  ;;  %4535 = vmatprep.subr.bf16.mxu0 %v5211_v20  ;;  %v5220_v16 = vld [vmem:[#allocation12 + $0x1d8] sm:$0xff]  }
 0x464   :  { %4536 = vmatpush3.bf16.msra.mxu0 %v5213_v21 }
 0x465   :  { %4537 = vmatprep.subr.bf16.mxu0 %v5215_v22 }
 0x468   :  { %4538 = vmatpush3.bf16.msra.mxu0 %v5217_v23 }
 0x469   :  { %4579 = vmatprep.subr.bf16.mxu0 %v5219_v24 }
 0x49e   :  { %v2564_v55 = vpop.f32.mrb[20].mxu1 }
 0x49f   :  { %v2575_v56 = vadd.f32 %v2564_v55, %v2291_v39  ;;  %v2566_v57 = vpop.f32.mrb[21].mxu1 }
 0x4a0   :  { %v2576_v58 = vadd.f32 %v2566_v57, %v2293_v62  ;;  %v2568_v61 = vpop.f32.mrb[22].mxu1 }
 0x4a1   :  { %v2569_v4 = vpop.f32.mrb[23].mxu1  ;;  %v5210_v61 = vld [vmem:[#allocation12 + $0x180] sm:$0xff]  }
 0x4de   :  { %v2836_v25 = vpop.f32.mrb[24].mxu1 }
 0x4df   :  { %v2847_v26 = vadd.f32 %v2836_v25, %v2575_v56  ;;  %v2838_v27 = vpop.f32.mrb[25].mxu1 }
 0x4e0   :  { %v2848_v28 = vadd.f32 %v2838_v27, %v2576_v58  ;;  %v2840_v29 = vpop.f32.mrb[26].mxu1 }
 0x4e1   :  { %v2841_v30 = vpop.f32.mrb[27].mxu1 }
 0x516   :  { %v3088_v35 = vpop.f32.mrb[8].mxu1 }
 0x517   :  { %v3123_v36 = vadd.f32 %v3116_v33, %v3088_v35  ;;  %v3090_v18 = vpop.f32.mrb[9].mxu1 }
 0x518   :  { %v3124_v19 = vadd.f32 %v3120_v34, %v3090_v18  ;;  %v3092_v10 = vpop.f32.mrb[10].mxu1  ;;  %v5224_v18 = vld [vmem:[#allocation12 + $0x1e0] sm:$0xff]  }
 0x519   :  { %v3129_v0 = vmax.f32 %v3123_v36, 0.0  ;;  %v3125_v37 = vadd.f32 %v3116_v33, %v3092_v10  ;;  %v3094_v38 = vpop.f32.mrb[11].mxu1 }
 0x51a   :  { %v3130_v39 = vmax.f32 %v3124_v19, 0.0  ;;  %v3126_v40 = vadd.f32 %v3120_v34, %v3094_v38 }
 0x51b   :  { %v3131_v62 = vmax.f32 %v3125_v37, 0.0 }
 0x51c   :  { %v4520_v41 = vpack.c.bf16 %v3130_v39, %v3129_v0  ;;  %v3132_v11 = vmax.f32 %v3126_v40, 0.0  ;;  %v5221_v40 = vld [vmem:[#allocation12 + $0x100] sm:$0xff]  }
 0x51e   :  { %v3155_v42 = vrot.slane %v4520_v41, 5  ;;  %v4521_v43 = vpack.c.bf16 %v3132_v11, %v3131_v62  ;;  %v3098_v6 = vpop.f32.mrb[28].mxu1 }
 0x51f   :  { %v3109_v45 = vadd.f32 %v3098_v6, %v2847_v26  ;;  %v3100_v46 = vpop.f32.mrb[29].mxu1 }
 0x520   :  { %v3156_v47 = vrot.slane %v3155_v42, 4  ;;  %3167 = vst [vmem:[#allocation4] sm:$0x88] %v3155_v42  ;;  %v3157_v32 = vrot.slane %v4521_v43, 5  ;;  %v3110_v44 = vadd.f32 %v3100_v46, %v2848_v28  ;;  %v3102_v60 = vpop.f32.mrb[30].mxu1  ;;  %v5223_v42 = vld [vmem:[#allocation12 + $0x148] sm:$0xff]  }
 0x521   :  { %v3127_v48 = vadd.f32 %v3116_v33, %v3109_v45  ;;  %v3103_v49 = vpop.f32.mrb[31].mxu1  ;;  %v5226_v43 = vld [vmem:[#allocation12 + $0x1a0] sm:$0xff]   ;;  %v5227_v60 = vld [vmem:[#allocation12 + $0x150] sm:$0xff]  }
 0x522   :  { %v3158_v50 = vsel %vm5655_vm6, %v3156_v47, %v3157_v32  ;;  %v3128_v51 = vadd.f32 %v3120_v34, %v3110_v44  ;;  %v3159_v8 = vrot.slane %v3157_v32, 4  ;;  %v5228_v47 = vld [vmem:[#allocation12 + $0x1e8] sm:$0xff]   ;;  %v5232_v49 = vld [vmem:[#allocation12 + $0x1f0] sm:$0xff]  }
 0x523   :  { %v3133_v52 = vmax.f32 %v3127_v48, 0.0  ;;  %v5225_v44 = vld [vmem:[#allocation12 + $0x108] sm:$0xff]  }
 0x524   :  { %v3134_v53 = vmax.f32 %v3128_v51, 0.0  ;;  %v5230_v48 = vld [vmem:[#allocation12 + $0x1a8] sm:$0xff]   ;;  %v5231_v51 = vld [vmem:[#allocation12 + $0x158] sm:$0xff]  }
 0x526   :  { %v4522_v54 = vpack.c.bf16 %v3134_v53, %v3133_v52  ;;  %v5234_v52 = vld [vmem:[#allocation12 + $0x1b0] sm:$0xff]  }
 0x527   :  { %v3171_v55 = vld [vmem:[#allocation4] sm:$0xff] }
 0x528   :  { %v3160_v56 = vrot.slane %v4522_v54, 5  ;;  %v4447_v57 = vcombine.low %v3171_v55, %v3158_v50  ;;  %v4448_v58 = vcombine.high %v3171_v55, %v3158_v50  ;;  %v3207_v13 = vld [vmem:[#allocation4] sm:$0xee]  ;;  %v3780_v53 = vld [vmem:[#allocation4 + $0x20] sm:$0x11] }
 0x529   :  { %v3776_v2 = vld [vmem:[#allocation4] sm:$0x88]  ;;  %v4428_v14 = vcombine.high %v3207_v13, %v3158_v50  ;;  %v4427_v59 = vcombine.low %v3207_v13, %v3158_v50 }
 0x52a   :  { %v3161_v4 = vsel %vm5655_vm6, %v3159_v8, %v3160_v56  ;;  %v3162_v5 = vrot.slane %v3160_v56, 4  ;;  %3555 = vmatprep.mubr.bf16.mxu1 %v4448_v58  ;;  %v4487_v15 = vcombine.low %v3776_v2, %v3158_v50  ;;  %v3572_v63 = vld [vmem:[#allocation4] sm:$0xcc]  ;;  %v4488_v17 = vcombine.high %v3776_v2, %v3158_v50  ;;  %v5235_v56 = vld [vmem:[#allocation12 + $0x160] sm:$0xff]  }
 0x52b   :  { %3556 = vmatmul.mubr.bf16.vlgmr.msra.gmra.mrb[32].mxu1 %v4447_v57  ;;  %v3261_v20 = vrot.slane %v4428_v14, 1  ;;  %v4467_v21 = vcombine.low %v3572_v63, %v3158_v50  ;;  %v4468_v26 = vcombine.high %v3572_v63, %v3158_v50  ;;  %v3258_v36 = vrot.slane %v4427_v59, 1  ;;  %v5229_v50 = vld [vmem:[#allocation12 + $0x110] sm:$0xff]   ;;  %v5236_v54 = vld [vmem:[#allocation12 + $0x1f8] sm:$0xff]   ;;  %v5237_v58 = vld [vmem:[#allocation12 + $0x120] sm:$0xff]  }
 0x52c   :  { %3170 = vst [vmem:[#allocation4 + $0x18] sm:$0x33] %v3162_v5  ;;  %4608 = vmatpush3.bf16.msra.mxu1 %v5210_v61  ;;  %v3835_v25 = vrot.slane %v4487_v15, 3  ;;  %v3838_v34 = vrot.slane %v4488_v17, 3  ;;  %v5233_v55 = vld [vmem:[#allocation12 + $0x118] sm:$0xff]   ;;  %v4492_v8 = vcombine.high %v3780_v53, %v3780_v53  ;;  %v5240_v5 = vld [vmem:[#allocation12 + $0x128] sm:$0xff]  }
 0x52d   :  { %4609 = vmatprep.subr.bf16.mxu1 %v5212_v3  ;;  %v3617_v0 = vrot.slane %v4467_v21, 2  ;;  %v3620_v62 = vrot.slane %v4468_v26, 2  ;;  %v5238_v57 = vld [vmem:[#allocation12 + $0x1b8] sm:$0xff]   ;;  %v5239_v3 = vld [vmem:[#allocation12 + $0x168] sm:$0xff]  }
 0x52e   :  { %v3843_v61 = vrot.slane %v4492_v8, 3  ;;  %v5244_v14 = vld [vmem:[#allocation12 + $0x178] sm:$0xff]  }
 0x52f   :  { %v5246_v63 = vld [vmem:[#allocation12 + $0x138] sm:$0xff]  }
 0x530   :  { %4610 = vmatpush3.bf16.msra.mxu1 %v5214_v12  ;;  %v5242_v12 = vld [vmem:[#allocation12 + $0x170] sm:$0xff]  }
 0x531   :  { %4611 = vmatprep.subr.bf16.mxu1 %v5216_v7  ;;  %v5243_v7 = vld [vmem:[#allocation12 + $0x130] sm:$0xff]  }
 0x533   :  { %v3174_v22 = vld [vmem:[#allocation4 + $0x18] sm:$0x33] }
 0x534   :  { %v3208_v23 = vld [vmem:[#allocation4 + $0x18] sm:$0x77]  ;;  %v4450_v27 = vcombine.high %v3161_v4, %v3174_v22  ;;  %4612 = vmatpush3.bf16.msra.mxu1 %v5218_v1  ;;  %v4449_v28 = vcombine.low %v3161_v4, %v3174_v22 }
 0x535   :  { %v3779_v24 = vld [vmem:[#allocation4 + $0x18] sm:$0xff]  ;;  %v4430_v29 = vcombine.high %v3161_v4, %v3208_v23  ;;  %4613 = vmatprep.subr.bf16.mxu1 %v5220_v16  ;;  %v4429_v35 = vcombine.low %v3161_v4, %v3208_v23 }
 0x536   :  { %v5663_v30 = vcombine.low %v3161_v4, %v3779_v24  ;;  %v5665_v33 = vcombine.high %v3161_v4, %v3779_v24  ;;  %3563 = vmatprep.mubr.bf16.mxu1 %v4450_v27  ;;  %v4491_v4 = vcombine.low %v3780_v53, %v3780_v53 }
 0x537   :  { %v3262_v19 = vrot.slane %v4430_v29, 1  ;;  %3564 = vmatmul.mubr.bf16.gmra.mrb[36].mxu1 %v4449_v28  ;;  %v3259_v39 = vrot.slane %v4429_v35, 1 }
 0x538   :  { %v3836_v10 = vrot.slane %v5663_v30, 3  ;;  %v3618_v37 = vrot.slane %v5663_v30, 2  ;;  %v3839_v38 = vrot.slane %v5665_v33, 3  ;;  %v3621_v41 = vrot.slane %v5665_v33, 2  ;;  %4614 = vmatpush3.bf16.msra.mxu1 %v5222_v31 }
 0x539   :  { %v3263_v11 = vsel %vm1850_vm3, %v3261_v20, %v3262_v19  ;;  %v3260_v46 = vsel %vm1850_vm3, %v3258_v36, %v3259_v39  ;;  %4615 = vmatprep.subr.bf16.mxu1 %v5224_v18  ;;  %v3841_v2 = vrot.slane %v4491_v4, 3 }
 0x53a   :  { %v3837_v6 = vsel %vm1269_vm2, %v3835_v25, %v3836_v10  ;;  %v3619_v9 = vsel %vm1008_vm1, %v3617_v0, %v3618_v37  ;;  %3396 = vmatprep.mubr.bf16.mxu0 %v3263_v11  ;;  %v3840_v45 = vsel %vm1269_vm2, %v3838_v34, %v3839_v38  ;;  %v3622_v32 = vsel %vm1008_vm1, %v3620_v62, %v3621_v41 }
 0x53b   :  { %3977 = vmatprep.mubr.bf16.mxu1 %v3840_v45  ;;  %3397 = vmatmul.mubr.bf16.vlgmr.msra.gmra.mrb[12].mxu0 %v3260_v46  ;;  %v3844_v13 = vsel %vm1269_vm2, %v3839_v38, %v3843_v61  ;;  %v3842_v15 = vsel %vm1269_vm2, %v3836_v10, %v3841_v2 }
 0x53c   :  { %4580 = vmatpush3.bf16.msra.mxu0 %v5221_v40  ;;  %3404 = vmatprep.mubr.bf16.mxu0 %v3262_v19 }
 0x53d   :  { %4581 = vmatprep.subr.bf16.mxu0 %v5223_v42  ;;  %4616 = vmatpush3.bf16.msra.mxu1 %v5226_v43 }
 0x53e   :  { %4617 = vmatprep.subr.bf16.mxu1 %v5228_v47 }
 0x540   :  { %4582 = vmatpush3.bf16.msra.mxu0 %v5225_v44 }
 0x541   :  { %4583 = vmatprep.subr.bf16.mxu0 %v5227_v60  ;;  %4618 = vmatpush3.bf16.msra.mxu1 %v5230_v48 }
 0x542   :  { %4619 = vmatprep.subr.bf16.mxu1 %v5232_v49 }
 0x543   :  { %3405 = vmatmul.mubr.bf16.gmra.mrb[16].mxu0 %v3259_v39 }
 0x544   :  { %4584 = vmatpush3.bf16.msra.mxu0 %v5229_v50  ;;  %3755 = vmatprep.mubr.bf16.mxu0 %v3622_v32 }
 0x545   :  { %4585 = vmatprep.subr.bf16.mxu0 %v5231_v51  ;;  %4620 = vmatpush3.bf16.msra.mxu1 %v5234_v52 }
 0x546   :  { %4621 = vmatprep.subr.bf16.mxu1 %v5236_v54  ;;  %v4509_v54 = vld [vmem:[%s5714_s8] ss:$0 sm:$0xff] }
 0x548   :  { %4586 = vmatpush3.bf16.msra.mxu0 %v5233_v55 }
 0x549   :  { %4587 = vmatprep.subr.bf16.mxu0 %v5235_v56  ;;  %4622 = vmatpush3.bf16.msra.mxu1 %v5238_v57 }
 0x54c   :  { %4588 = vmatpush3.bf16.msra.mxu0 %v5237_v58  ;;  %3978 = vmatmul.mubr.bf16.vlgmr.msra.gmra.mrb[40].mxu1 %v3837_v6 }
 0x54d   :  { %4589 = vmatprep.subr.bf16.mxu0 %v5239_v3  ;;  %3985 = vmatprep.mubr.bf16.mxu1 %v3844_v13 }
 0x550   :  { %4590 = vmatpush3.bf16.msra.mxu0 %v5240_v5 }
 0x551   :  { %4591 = vmatprep.subr.bf16.mxu0 %v5242_v12 }
 0x554   :  { %4592 = vmatpush3.bf16.msra.mxu0 %v5243_v7  ;;  %3986 = vmatmul.mubr.bf16.gmra.mrb[44].mxu1 %v3842_v15 }
 0x555   :  { %4593 = vmatprep.subr.bf16.mxu0 %v5244_v14 }
 0x558   :  { %4594 = vmatpush3.bf16.msra.mxu0 %v5246_v63 }
 0x55b   :  { %3756 = vmatmul.mubr.bf16.vlgmr.msra.gmra.mrb[20].mxu0 %v3619_v9 }
 0x55c   :  { %3763 = vmatprep.mubr.bf16.mxu0 %v3621_v41 }
 0x563   :  { %3764 = vmatmul.mubr.bf16.gmra.mrb[24].mxu0 %v3618_v37 }
 0x5fe   :  { %v4567_v1 = vpop.f32.mrb[32].mxu1 }
 0x5ff   :  { %v4568_v16 = vpop.f32.mrb[33].mxu1 }
 0x600   :  { %v4569_v17 = vadd.f32 %v4568_v16, %v4567_v1  ;;  %v4570_v59 = vpop.f32.mrb[34].mxu1 }
 0x601   :  { %v4571_v20 = vpop.f32.mrb[35].mxu1 }
 0x602   :  { %v4572_v21 = vadd.f32 %v4571_v20, %v4570_v59 }
 0x60a   :  { %v4573_v22 = vpop.f32.mrb[36].mxu1 }
 0x60b   :  { %v4574_v23 = vpop.f32.mrb[37].mxu1 }
 0x60c   :  { %v4575_v24 = vadd.f32 %v4574_v23, %v4573_v22  ;;  %v4576_v25 = vpop.f32.mrb[38].mxu1 }
 0x60d   :  { %v4577_v27 = vpop.f32.mrb[39].mxu1 }
 0x60e   :  { %v4539_v26 = vpop.f32.mrb[12].mxu0  ;;  %v4578_v28 = vadd.f32 %v4577_v27, %v4576_v25 }
 0x60f   :  { %v4540_v29 = vpop.f32.mrb[13].mxu0 }
 0x610   :  { %v4541_v31 = vadd.f32 %v4540_v29, %v4539_v26  ;;  %v4542_v33 = vpop.f32.mrb[14].mxu0 }
 0x611   :  { %v4543_v34 = vpop.f32.mrb[15].mxu0 }
 0x612   :  { %v3558_v35 = vadd.f32 %v4569_v17, %v4541_v31  ;;  %v4544_v30 = vadd.f32 %v4543_v34, %v4542_v33 }
 0x614   :  { %v3561_v36 = vadd.f32 %v4572_v21, %v4544_v30 }
 0x616   :  { %v4545_v18 = vpop.f32.mrb[16].mxu0 }
 0x617   :  { %v4546_v19 = vpop.f32.mrb[17].mxu0 }
 0x618   :  { %v4547_v10 = vadd.f32 %v4546_v19, %v4545_v18  ;;  %v4548_v0 = vpop.f32.mrb[18].mxu0 }
 0x619   :  { %v4549_v37 = vpop.f32.mrb[19].mxu0 }
 0x61a   :  { %v3566_v38 = vadd.f32 %v4575_v24, %v4547_v10  ;;  %v4550_v39 = vadd.f32 %v4549_v37, %v4548_v0 }
 0x61c   :  { %v3569_v40 = vadd.f32 %v4578_v28, %v4550_v39 }
 0x61f   :  { %v4623_v62 = vpop.f32.mrb[40].mxu1 }
 0x620   :  { %v4624_v41 = vpop.f32.mrb[41].mxu1 }
 0x621   :  { %v4625_v11 = vadd.f32 %v4624_v41, %v4623_v62  ;;  %v4626_v42 = vpop.f32.mrb[42].mxu1 }
 0x622   :  { %v4627_v43 = vpop.f32.mrb[43].mxu1 }
 0x623   :  { %v4628_v6 = vadd.f32 %v4627_v43, %v4626_v42 }
 0x627   :  { %v4629_v9 = vpop.f32.mrb[44].mxu1 }
 0x628   :  { %v4630_v45 = vpop.f32.mrb[45].mxu1 }
 0x629   :  { %v4631_v46 = vadd.f32 %v4630_v45, %v4629_v9  ;;  %v4632_v47 = vpop.f32.mrb[46].mxu1 }
 0x62a   :  { %v4633_v32 = vpop.f32.mrb[47].mxu1 }
 0x62b   :  { %v4634_v44 = vadd.f32 %v4633_v32, %v4632_v47 }
 0x62e   :  { %v4595_v60 = vpop.f32.mrb[20].mxu0 }
 0x62f   :  { %v4596_v48 = vpop.f32.mrb[21].mxu0 }
 0x630   :  { %v4597_v49 = vadd.f32 %v4596_v48, %v4595_v60  ;;  %v4598_v50 = vpop.f32.mrb[22].mxu0 }
 0x631   :  { %v4599_v51 = vpop.f32.mrb[23].mxu0 }
 0x632   :  { %v3772_v52 = vadd.f32 %v4597_v49, %v3558_v35  ;;  %v4600_v53 = vadd.f32 %v4599_v51, %v4598_v50 }
 0x634   :  { %v3994_v55 = vadd.f32 %v4625_v11, %v3772_v52  ;;  %v3773_v8 = vadd.f32 %v4600_v53, %v3561_v36 }
 0x636   :  { %v4005_v56 = vadd.f32 %v4509_v54, %v3994_v55  ;;  %v3995_v57 = vadd.f32 %v4628_v6, %v3773_v8  ;;  %v4601_v58 = vpop.f32.mrb[24].mxu0 }
 0x637   :  { %v4602_v61 = vpop.f32.mrb[25].mxu0 }
 0x638   :  { %v4510_v3 = vmul.f32 -1.442695, %v4005_v56  ;;  %v4006_v4 = vadd.f32 %v4509_v54, %v3995_v57  ;;  %v4603_v5 = vadd.f32 %v4602_v61, %v4601_v58  ;;  %v4604_v13 = vpop.f32.mrb[26].mxu0 }
 0x639   :  { %v4605_v12 = vpop.f32.mrb[27].mxu0 }
 0x63a   :  { %5247 = vpow2.f32 %v4510_v3  ;;  %v4511_v2 = vmul.f32 -1.442695, %v4006_v4  ;;  %v3774_v7 = vadd.f32 %v4603_v5, %v3566_v38  ;;  %v4606_v14 = vadd.f32 %v4605_v12, %v4604_v13 }
 0x63c   :  { %5249 = vpow2.f32 %v4511_v2  ;;  %v3996_v15 = vadd.f32 %v4631_v46, %v3774_v7  ;;  %v3775_v63 = vadd.f32 %v4606_v14, %v3569_v40 }
 0x63e   :  { %v4007_v1 = vadd.f32 %v4509_v54, %v3996_v15  ;;  %v3997_v16 = vadd.f32 %v4634_v44, %v3775_v63 }
 0x640   :  { %v4512_v17 = vmul.f32 -1.442695, %v4007_v1  ;;  %v4008_v59 = vadd.f32 %v4509_v54, %v3997_v16 }
 0x642   :  { %5251 = vpow2.f32 %v4512_v17  ;;  %v4513_v20 = vmul.f32 -1.442695, %v4008_v59 }
 0x644   :  { %v5248_v21 = vpop.eup %5247  ;;  %5253 = vpow2.f32 %v4513_v20 }
 0x645   :  { %v4021_v22 = vadd.f32 1.0, %v5248_v21 }
 0x646   :  { %v5250_v23 = vpop.eup %5249 }
 0x647   :  { %5255 = vrcp.f32 %v4021_v22  ;;  %v4022_v24 = vadd.f32 1.0, %v5250_v23 }
 0x649   :  { %5257 = vrcp.f32 %v4022_v24 }
 0x64c   :  { %v5252_v25 = vpop.eup %5251 }
 0x64d   :  { %v4023_v26 = vadd.f32 1.0, %v5252_v25 }
 0x64e   :  { %v5254_v27 = vpop.eup %5253 }
 0x64f   :  { %5259 = vrcp.f32 %v4023_v26  ;;  %v4024_v28 = vadd.f32 1.0, %v5254_v27 }
 0x651   :  { %v5256_v29 = vpop.eup %5255  ;;  %5261 = vrcp.f32 %v4024_v28 }
 0x652   :  { %4033 = vst [vmem:[%s5715_s9] sm:$0xff] %v5256_v29 }
 0x653   :  { %v5258_v31 = vpop.eup %5257 }
 0x654   :  { %4034 = vst [vmem:[%s5715_s9 + $0x8] sm:$0xff] %v5258_v31 }
 0x659   :  { %v5260_v33 = vpop.eup %5259 }
 0x65a   :  { %4035 = vst [vmem:[%s5715_s9 + $0x10] sm:$0xff] %v5260_v33 }
 0x65b   :  { %v5262_v34 = vpop.eup %5261 }
 0x65c   :  { %4036 = vst [vmem:[%s5715_s9 + $0x18] sm:$0xf] %v5262_v34 }
 0x65d   :  { %4041 = vsyncpa [#allocation6], 1 }
 0x65e   :  { %4042 = vsyncpa [#allocation8], 1 }
 0x65f   :  { %4043 = vsyncpa [#allocation11], 1 }

</bundles_post_ra>
